<compile_context>
chip_gen: v5e
topology: v5e:2x2
jax: 0.10.0
libtpu: 0.0.40
codegen_flags: <defaults>
</compile_context>

<pallas_src>
import jax
import jax.numpy as jnp
from jax.experimental import pallas as pl
from jax.experimental.pallas import tpu as pltpu

LEAKY_SLOPE = 0.01   # torch.nn.LeakyReLU default negative_slope
NEG_BIG = -1e30      # bias for padded logit lanes -> exp() == 0


def _round_up(x, m):
    return (x + m - 1) // m * m


# ----------------------------------------------------------------------------
# Pallas kernel: fused ClassUp MLP (4 Linears, 3 LeakyReLUs) + softmax over dim=1
# ----------------------------------------------------------------------------
def _classup_kernel(x_ref,
                    w1_ref, b1_ref,
                    w2_ref, b2_ref,
                    w3_ref, b3_ref,
                    w4_ref, b4_ref,
                    out_ref):
    def linear(h, w_ref, b_ref):
        # bf16 x bf16 on the MXU, f32 accumulation; bias add in f32.
        return jnp.dot(h.astype(jnp.bfloat16), w_ref[...],
                       preferred_element_type=jnp.float32) + b_ref[...]

    def leaky_relu(h):
        # one mul + one max (exact for slope < 1)
        return jnp.maximum(h, LEAKY_SLOPE * h)

    h = leaky_relu(linear(x_ref[...], w1_ref, b1_ref))
    h = leaky_relu(linear(h, w2_ref, b2_ref))
    h = leaky_relu(linear(h, w3_ref, b3_ref))
    logits = linear(h, w4_ref, b4_ref)  # padded lanes carry NEG_BIG bias

    # numerically stable softmax over the feature axis (torch dim=1)
    m = jnp.max(logits, axis=-1, keepdims=True)
    e = jnp.exp(logits - m)
    inv = pl.reciprocal(jnp.sum(e, axis=-1, keepdims=True), approx=True)
    out_ref[...] = e * inv


def _classup_pallas(z, params, *, out_dim, max_batch_block=128):
    """z: (B, z_dim) float -> (B, out_dim) float32 (rows sum to 1)."""
    B, z_dim = z.shape
    z_pad = params["w1"].shape[0]
    hid_pad = params["w2"].shape[0]
    out_pad = params["w4"].shape[1]

    # batch tile: multiple of 8 sublanes, capped so a tile's activations stay small
    TB = min(_round_up(B, 8), max_batch_block)
    B_pad = _round_up(B, TB)

    x = jnp.zeros((B_pad, z_pad), jnp.float32)
    x = x.at[:B, :z_dim].set(z.astype(jnp.float32))

    grid = (B_pad // TB,)

    def w_spec(arr):
        return pl.BlockSpec(arr.shape, lambda i: (0, 0))

    in_specs = [
        pl.BlockSpec((TB, z_pad), lambda i: (i, 0)),
        w_spec(params["w1"]), w_spec(params["b1"]),
        w_spec(params["w2"]), w_spec(params["b2"]),
        w_spec(params["w3"]), w_spec(params["b3"]),
        w_spec(params["w4"]), w_spec(params["b4"]),
    ]
    out_specs = pl.BlockSpec((TB, out_pad), lambda i: (i, 0))

    # cost estimate for the XLA scheduler
    flops = 2 * B_pad * (z_pad * hid_pad + 2 * hid_pad * hid_pad + hid_pad * out_pad)
    weight_bytes = sum(int(v.size) * v.dtype.itemsize for v in params.values())
    bytes_accessed = weight_bytes + int(x.size) * 4 + B_pad * out_pad * 4
    cost = pl.CostEstimate(flops=flops,
                           transcendentals=B_pad * (out_pad + 1),
                           bytes_accessed=bytes_accessed)

    # VMEM budget: double-buffered weights + one batch tile of in/out/activations,
    # plus headroom; clamped to a v7x-safe ceiling (64 MiB physical per TC).
    act_bytes = TB * (z_pad + out_pad + 2 * hid_pad) * 4
    vmem_needed = 2 * (weight_bytes + act_bytes) + (4 << 20)
    vmem_limit = int(min(max(vmem_needed, 16 << 20), 56 << 20))

    out = pl.pallas_call(
        _classup_kernel,
        out_shape=jax.ShapeDtypeStruct((B_pad, out_pad), jnp.float32),
        grid=grid,
        in_specs=in_specs,
        out_specs=out_specs,
        compiler_params=pltpu.CompilerParams(
            dimension_semantics=("parallel",),
            vmem_limit_bytes=vmem_limit),
        cost_estimate=cost,
    )(x,
      params["w1"], params["b1"],
      params["w2"], params["b2"],
      params["w3"], params["b3"],
      params["w4"], params["b4"])

    return out[:B, :out_dim]


# ----------------------------------------------------------------------------
# Parameters (padded to lane/sublane-friendly shapes, weights in bf16)
# ----------------------------------------------------------------------------
def init_classup_params(key, dim, hidden_dim, out_dim):
    """Synthetic params for ClassUp(dim, depth=2, hidden_dim, out_dim), padded to
    multiples of 128 on every feature axis.  Weights bf16, biases f32."""
    dim_p = _round_up(dim, 128)
    hid_p = _round_up(hidden_dim, 128)
    out_p = _round_up(out_dim, 128)
    layer_dims = [(dim, hidden_dim, dim_p, hid_p),
                  (hidden_dim, hidden_dim, hid_p, hid_p),
                  (hidden_dim, hidden_dim, hid_p, hid_p),
                  (hidden_dim, out_dim, hid_p, out_p)]
    params = {}
    for i, (fi, fo, fi_p, fo_p) in enumerate(layer_dims, start=1):
        key, kw, kb = jax.random.split(key, 3)
        bound = 1.0 / float(fi) ** 0.5
        # stored as (in, out): equivalent to torch Linear weight (out, in) transposed
        w = jax.random.uniform(kw, (fi, fo), jnp.float32, -bound, bound)
        b = jax.random.uniform(kb, (fo,), jnp.float32, -bound, bound)
        w_pad = jnp.zeros((fi_p, fo_p), jnp.float32).at[:fi, :fo].set(w)
        # padded output lanes of the FINAL layer get a huge negative bias so their
        # softmax contribution is exactly zero; earlier layers pad with 0.
        pad_bias = NEG_BIG if i == len(layer_dims) else 0.0
        b_pad = jnp.full((1, fo_p), pad_bias, jnp.float32).at[0, :fo].set(b)
        params[f"w{i}"] = w_pad.astype(jnp.bfloat16)  # halve HBM traffic + VMEM
        params[f"b{i}"] = b_pad                       # tiny, keep f32
    return params


# ----------------------------------------------------------------------------
# Module wrapper
# ----------------------------------------------------------------------------
class BigGANDecoderWrapperPallas:
    """JAX/Pallas port of BigGANDecoderWrapper.

    NOTE: the real module uses class_embedding_dim=1000 and a pretrained BigGAN
    decoder; class_embedding_dim is taken from the config so the demo can use
    small TPU-friendly sizes (padding to 128 multiples happens internally).
    """

    def __init__(self, config, key):
        self.z_dim = config["z_dim"]
        self.do_pre_processing = config["pre_process"]
        self.class_embedding_dim = config["class_embedding_dim"]
        hidden = 2 * self.class_embedding_dim
        self.classup_params = init_classup_params(
            key, self.z_dim, hidden, self.class_embedding_dim)
        # TODO(synk): load_variable_latsize_generator(image_size, z_dim, pretrained,
        #             use_actnorm, n_class) — external pretrained BigGAN generator,
        #             not available in-script.

    def __call__(self, x, labels=None):
        # x is NCHW: (B, z_dim, 1, 1) — squeeze trailing 1x1 spatial dims.
        z = x.reshape(x.shape[0], x.shape[1])
        emb = _classup_pallas(z, self.classup_params,
                              out_dim=self.class_embedding_dim)
        # TODO(synk): x = self.decoder(x, emb) not translated (external BigGAN).
        return emb


# ----------------------------------------------------------------------------
# Pure-JAX reference (matches the kernel's bf16-weight / f32-accumulate numerics)
# ----------------------------------------------------------------------------
def _classup_ref(z, params, out_dim):
    B, z_dim = z.shape
    z_pad = params["w1"].shape[0]
    h = jnp.zeros((B, z_pad), jnp.float32).at[:, :z_dim].set(z.astype(jnp.float32))
    for i in range(1, 5):
        w = params[f"w{i}"].astype(jnp.float32)
        b = params[f"b{i}"]
        h = h.astype(jnp.bfloat16).astype(jnp.float32) @ w + b
        if i < 4:
            h = jnp.maximum(h, LEAKY_SLOPE * h)
    p = jax.nn.softmax(h, axis=1)
    return p[:, :out_dim]


if __name__ == "__main__":
    key = jax.random.PRNGKey(0)
    k_param, k_x = jax.random.split(key)

    config = {
        "z_dim": 64,
        "pre_process": False,
        "in_size": 16,
        "use_actnorm_in_dec": False,
        "pretrained": False,
        "class_embedding_dim": 256,   # real module: 1000 (kept small for the demo)
    }

    model = BigGANDecoderWrapperPallas(config, k_param)

    # NCHW latent input, matching the PyTorch module's expected (B, z_dim, 1, 1)
    x = jax.random.normal(k_x, (2, config["z_dim"], 1, 1), jnp.float32)

    out = model(x)
    out = jax.block_until_ready(out)

    ref = _classup_ref(x.reshape(2, config["z_dim"]), model.classup_params,
                       config["class_embedding_dim"])
    assert out.shape == (2, config["class_embedding_dim"])
    assert jnp.allclose(out, ref, atol=2e-3, rtol=1e-2)
    assert jnp.allclose(jnp.sum(out, axis=1), jnp.ones(2), atol=2e-3)

    print("KERNEL_OK")
</pallas_src>

<mosaic_0001>
module attributes {stable_mosaic.version = 11 : i64} {
  func.func @_classup_kernel(%arg0: i32, %arg1: memref<8x128xf32, #tpu.memory_space<vmem>>, %arg2: memref<128x512xbf16, #tpu.memory_space<vmem>>, %arg3: memref<1x512xf32, #tpu.memory_space<vmem>>, %arg4: memref<512x512xbf16, #tpu.memory_space<vmem>>, %arg5: memref<1x512xf32, #tpu.memory_space<vmem>>, %arg6: memref<512x512xbf16, #tpu.memory_space<vmem>>, %arg7: memref<1x512xf32, #tpu.memory_space<vmem>>, %arg8: memref<512x256xbf16, #tpu.memory_space<vmem>>, %arg9: memref<1x256xf32, #tpu.memory_space<vmem>>, %arg10: memref<8x256xf32, #tpu.memory_space<vmem>>) attributes {dimension_semantics = [#tpu.dimension_semantics<parallel>], iteration_bounds = array<i64: 1>, scalar_prefetch = 0 : i64, scratch_operands = 0 : i64, tpu.core_type = #tpu.core_type<tc>, window_params = [{transform_indices = @transform_0, window_bounds = array<i64: 8, 128>}, {pipeline_mode = #tpu.pipeline_mode<synchronous>, transform_indices = @transform_1, window_bounds = array<i64: 128, 512>}, {pipeline_mode = #tpu.pipeline_mode<synchronous>, transform_indices = @transform_2, window_bounds = array<i64: 1, 512>}, {pipeline_mode = #tpu.pipeline_mode<synchronous>, transform_indices = @transform_3, window_bounds = array<i64: 512, 512>}, {pipeline_mode = #tpu.pipeline_mode<synchronous>, transform_indices = @transform_4, window_bounds = array<i64: 1, 512>}, {pipeline_mode = #tpu.pipeline_mode<synchronous>, transform_indices = @transform_5, window_bounds = array<i64: 512, 512>}, {pipeline_mode = #tpu.pipeline_mode<synchronous>, transform_indices = @transform_6, window_bounds = array<i64: 1, 512>}, {pipeline_mode = #tpu.pipeline_mode<synchronous>, transform_indices = @transform_7, window_bounds = array<i64: 512, 256>}, {pipeline_mode = #tpu.pipeline_mode<synchronous>, transform_indices = @transform_8, window_bounds = array<i64: 1, 256>}, {transform_indices = @transform_9, window_bounds = array<i64: 8, 256>}]} {
    %c0 = arith.constant 0 : index
    %c0_0 = arith.constant 0 : index
    %0 = vector.load %arg1[%c0, %c0_0] : memref<8x128xf32, #tpu.memory_space<vmem>>, vector<8x128xf32>
    %1 = arith.truncf %0 : vector<8x128xf32> to vector<8x128xbf16>
    %c0_1 = arith.constant 0 : index
    %c0_2 = arith.constant 0 : index
    %2 = vector.load %arg2[%c0_1, %c0_2] : memref<128x512xbf16, #tpu.memory_space<vmem>>, vector<128x512xbf16>
    %cst = arith.constant dense<0.000000e+00> : vector<8x512xf32>
    %3 = tpu.matmul %1, %2, %cst {dimension_numbers = #tpu.dot_dimension_numbers<[1], [0], [0], [1], [0, 0, 1, 1], [], []>} : vector<8x128xbf16>, vector<128x512xbf16>, vector<8x512xf32> -> vector<8x512xf32>
    %c0_3 = arith.constant 0 : index
    %c0_4 = arith.constant 0 : index
    %4 = vector.load %arg3[%c0_3, %c0_4] : memref<1x512xf32, #tpu.memory_space<vmem>>, vector<1x512xf32>
    %5 = vector.broadcast %4 : vector<1x512xf32> to vector<8x512xf32>
    %6 = arith.addf %3, %5 : vector<8x512xf32>
    %cst_5 = arith.constant 0.00999999977 : f32
    %7 = vector.broadcast %cst_5 : f32 to vector<8x512xf32>
    %8 = arith.mulf %7, %6 : vector<8x512xf32>
    %9 = arith.maximumf %6, %8 : vector<8x512xf32>
    %10 = arith.truncf %9 : vector<8x512xf32> to vector<8x512xbf16>
    %c0_6 = arith.constant 0 : index
    %c0_7 = arith.constant 0 : index
    %11 = vector.load %arg4[%c0_6, %c0_7] : memref<512x512xbf16, #tpu.memory_space<vmem>>, vector<512x512xbf16>
    %cst_8 = arith.constant dense<0.000000e+00> : vector<8x512xf32>
    %12 = tpu.matmul %10, %11, %cst_8 {dimension_numbers = #tpu.dot_dimension_numbers<[1], [0], [0], [1], [0, 0, 1, 1], [], []>} : vector<8x512xbf16>, vector<512x512xbf16>, vector<8x512xf32> -> vector<8x512xf32>
    %c0_9 = arith.constant 0 : index
    %c0_10 = arith.constant 0 : index
    %13 = vector.load %arg5[%c0_9, %c0_10] : memref<1x512xf32, #tpu.memory_space<vmem>>, vector<1x512xf32>
    %14 = vector.broadcast %13 : vector<1x512xf32> to vector<8x512xf32>
    %15 = arith.addf %12, %14 : vector<8x512xf32>
    %cst_11 = arith.constant 0.00999999977 : f32
    %16 = vector.broadcast %cst_11 : f32 to vector<8x512xf32>
    %17 = arith.mulf %16, %15 : vector<8x512xf32>
    %18 = arith.maximumf %15, %17 : vector<8x512xf32>
    %19 = arith.truncf %18 : vector<8x512xf32> to vector<8x512xbf16>
    %c0_12 = arith.constant 0 : index
    %c0_13 = arith.constant 0 : index
    %20 = vector.load %arg6[%c0_12, %c0_13] : memref<512x512xbf16, #tpu.memory_space<vmem>>, vector<512x512xbf16>
    %cst_14 = arith.constant dense<0.000000e+00> : vector<8x512xf32>
    %21 = tpu.matmul %19, %20, %cst_14 {dimension_numbers = #tpu.dot_dimension_numbers<[1], [0], [0], [1], [0, 0, 1, 1], [], []>} : vector<8x512xbf16>, vector<512x512xbf16>, vector<8x512xf32> -> vector<8x512xf32>
    %c0_15 = arith.constant 0 : index
    %c0_16 = arith.constant 0 : index
    %22 = vector.load %arg7[%c0_15, %c0_16] : memref<1x512xf32, #tpu.memory_space<vmem>>, vector<1x512xf32>
    %23 = vector.broadcast %22 : vector<1x512xf32> to vector<8x512xf32>
    %24 = arith.addf %21, %23 : vector<8x512xf32>
    %cst_17 = arith.constant 0.00999999977 : f32
    %25 = vector.broadcast %cst_17 : f32 to vector<8x512xf32>
    %26 = arith.mulf %25, %24 : vector<8x512xf32>
    %27 = arith.maximumf %24, %26 : vector<8x512xf32>
    %28 = arith.truncf %27 : vector<8x512xf32> to vector<8x512xbf16>
    %c0_18 = arith.constant 0 : index
    %c0_19 = arith.constant 0 : index
    %29 = vector.load %arg8[%c0_18, %c0_19] : memref<512x256xbf16, #tpu.memory_space<vmem>>, vector<512x256xbf16>
    %cst_20 = arith.constant dense<0.000000e+00> : vector<8x256xf32>
    %30 = tpu.matmul %28, %29, %cst_20 {dimension_numbers = #tpu.dot_dimension_numbers<[1], [0], [0], [1], [0, 0, 1, 1], [], []>} : vector<8x512xbf16>, vector<512x256xbf16>, vector<8x256xf32> -> vector<8x256xf32>
    %c0_21 = arith.constant 0 : index
    %c0_22 = arith.constant 0 : index
    %31 = vector.load %arg9[%c0_21, %c0_22] : memref<1x256xf32, #tpu.memory_space<vmem>>, vector<1x256xf32>
    %32 = vector.broadcast %31 : vector<1x256xf32> to vector<8x256xf32>
    %33 = arith.addf %30, %32 : vector<8x256xf32>
    %cst_23 = arith.constant dense<0xFF800000> : vector<8xf32>
    %34 = vector.multi_reduction <maximumf>, %33, %cst_23 [1] : vector<8x256xf32> to vector<8xf32>
    %35 = vector.shape_cast %34 : vector<8xf32> to vector<8x1xf32>
    %36 = vector.broadcast %35 : vector<8x1xf32> to vector<8x256xf32>
    %37 = arith.subf %33, %36 : vector<8x256xf32>
    %38 = math.exp %37 : vector<8x256xf32>
    %cst_24 = arith.constant dense<0.000000e+00> : vector<8xf32>
    %39 = vector.multi_reduction <add>, %38, %cst_24 [1] : vector<8x256xf32> to vector<8xf32>
    %40 = vector.shape_cast %39 : vector<8xf32> to vector<8x1xf32>
    %41 = tpu.reciprocal %40 {approx = true} : vector<8x1xf32> -> vector<8x1xf32>
    %42 = vector.broadcast %41 : vector<8x1xf32> to vector<8x256xf32>
    %43 = arith.mulf %38, %42 : vector<8x256xf32>
    %c0_25 = arith.constant 0 : index
    %c0_26 = arith.constant 0 : index
    %44 = vector.load %arg10[%c0_25, %c0_26] : memref<8x256xf32, #tpu.memory_space<vmem>>, vector<8x256xf32>
    tpu.vector_store %arg10[%c0_25, %c0_26], %43 {strides = array<i32>} : memref<8x256xf32, #tpu.memory_space<vmem>>, vector<8x256xf32>,
    return
  }
  func.func @transform_0(%arg0: i32) -> (i32, i32) {
    %c0_i32 = arith.constant 0 : i32
    %c0_i32_0 = arith.constant 0 : i32
    return %arg0, %c0_i32 : i32, i32
  }
  func.func @transform_1(%arg0: i32) -> (i32, i32) {
    %c0_i32 = arith.constant 0 : i32
    %c0_i32_0 = arith.constant 0 : i32
    %c0_i32_1 = arith.constant 0 : i32
    return %c0_i32, %c0_i32_0 : i32, i32
  }
  func.func @transform_2(%arg0: i32) -> (i32, i32) {
    %c0_i32 = arith.constant 0 : i32
    %c0_i32_0 = arith.constant 0 : i32
    %c0_i32_1 = arith.constant 0 : i32
    return %c0_i32, %c0_i32_0 : i32, i32
  }
  func.func @transform_3(%arg0: i32) -> (i32, i32) {
    %c0_i32 = arith.constant 0 : i32
    %c0_i32_0 = arith.constant 0 : i32
    %c0_i32_1 = arith.constant 0 : i32
    return %c0_i32, %c0_i32_0 : i32, i32
  }
  func.func @transform_4(%arg0: i32) -> (i32, i32) {
    %c0_i32 = arith.constant 0 : i32
    %c0_i32_0 = arith.constant 0 : i32
    %c0_i32_1 = arith.constant 0 : i32
    return %c0_i32, %c0_i32_0 : i32, i32
  }
  func.func @transform_5(%arg0: i32) -> (i32, i32) {
    %c0_i32 = arith.constant 0 : i32
    %c0_i32_0 = arith.constant 0 : i32
    %c0_i32_1 = arith.constant 0 : i32
    return %c0_i32, %c0_i32_0 : i32, i32
  }
  func.func @transform_6(%arg0: i32) -> (i32, i32) {
    %c0_i32 = arith.constant 0 : i32
    %c0_i32_0 = arith.constant 0 : i32
    %c0_i32_1 = arith.constant 0 : i32
    return %c0_i32, %c0_i32_0 : i32, i32
  }
  func.func @transform_7(%arg0: i32) -> (i32, i32) {
    %c0_i32 = arith.constant 0 : i32
    %c0_i32_0 = arith.constant 0 : i32
    %c0_i32_1 = arith.constant 0 : i32
    return %c0_i32, %c0_i32_0 : i32, i32
  }
  func.func @transform_8(%arg0: i32) -> (i32, i32) {
    %c0_i32 = arith.constant 0 : i32
    %c0_i32_0 = arith.constant 0 : i32
    %c0_i32_1 = arith.constant 0 : i32
    return %c0_i32, %c0_i32_0 : i32, i32
  }
  func.func @transform_9(%arg0: i32) -> (i32, i32) {
    %c0_i32 = arith.constant 0 : i32
    %c0_i32_0 = arith.constant 0 : i32
    return %arg0, %c0_i32 : i32, i32
  }
}

</mosaic_0001>

<bundles_post_ra>
// kernel: tpu_custom_call.1
= control target key start
LH: loop header
LB: loop body
LE: loop exit
PB: predicated region body
PF: predicated region fallthrough
CT: control target
= control target key end

     0   :  { %14 = vsyncpa [#allocation3], 0  ;;  %s5096_s0 = inlined_call_operand.hbm [shape: f32[8,128], index: 0, kind: input, shape index: {}]   ;;  %s5097_s1 = inlined_call_operand.hbm [shape: bf16[128,512], index: 1, kind: input, shape index: {}]   ;;  %s5098_s2 = inlined_call_operand.hbm [shape: f32[1,512], index: 2, kind: input, shape index: {}]   ;;  %s5099_s3 = inlined_call_operand.hbm [shape: bf16[512,512], index: 3, kind: input, shape index: {}]   ;;  %s5100_s4 = inlined_call_operand.hbm [shape: f32[1,512], index: 4, kind: input, shape index: {}]   ;;  %s5101_s5 = inlined_call_operand.hbm [shape: bf16[512,512], index: 5, kind: input, shape index: {}]   ;;  %s5102_s6 = inlined_call_operand.vmem [shape: f32[1,512], index: 6, kind: input, shape index: {}]   ;;  %s5103_s7 = inlined_call_operand.hbm [shape: bf16[512,256], index: 7, kind: input, shape index: {}]   ;;  %s5104_s8 = inlined_call_operand.vmem [shape: f32[1,256], index: 8, kind: input, shape index: {}]   ;;  %s5105_s9 = inlined_call_operand.hbm [shape: f32[8,256], index: 9, kind: output, shape index: {}]  }
   0x1   :  { %15 = vsyncpa [#allocation6], 0 }
   0x2   :  { %16 = vsyncpa [#allocation9], 0 }
   0x3   :  { %17 = vsyncpa [#allocation12], 0  ;;  %s34_s11 = sshll.u32 %s5097_s1, 4  ;;  %s35_s11 = int_to_ptr.hbm [resolvable:$true] %s34_s11 }
   0x4   :  { %18 = vsyncpa [#allocation4], 0  ;;  %s4911_s12 = smov [#allocation5]   ;;  %s58_s16 = sshll.u32 %s5099_s3, 4  ;;  %s59_s16 = int_to_ptr.hbm [resolvable:$true] %s58_s16 }
   0x5   :  { %s36_s13 = sshll.u32 %s4911_s12, 4  ;;  %s4912_s17 = smov 256   ;;  %s37_s13 = int_to_ptr.vmem [resolvable:$true] %s36_s13 }
   0x6   :  { %s4913_s18 = smov 16   ;;  %s4914_s19 = smov [#allocation8]  }
   0x7   :  { %42 = dma.hbm_to_vmem [thread:$0]  %s35_s11, 4096, %s37_s13, [#allocation6], %s4912_s17, %s4912_s17, %s4913_s18  }
   0x8   :  { %s60_s20 = sshll.u32 %s4914_s19, 4  ;;  %s82_s23 = sshll.u32 %s5101_s5, 4  ;;  %s61_s20 = int_to_ptr.vmem [resolvable:$true] %s60_s20  ;;  %s83_s23 = int_to_ptr.hbm [resolvable:$true] %s82_s23 }
   0x9   :  { %66 = dma.hbm_to_vmem [thread:$0]  %s59_s16, 16384, %s61_s20, [#allocation9], %s4912_s17, %s4912_s17, %s4913_s18  }
   0xa   :  { %s24_s25 = sshll.u32 %s5096_s0, 4  ;;  %s4915_s26 = smov [#allocation11]   ;;  %s25_s25 = int_to_ptr.hbm [resolvable:$true] %s24_s25 }
   0xb   :  { %s84_s27 = sshll.u32 %s4915_s26, 4  ;;  %s4916_s3 = smov [#allocation2]   ;;  %s85_s27 = int_to_ptr.vmem [resolvable:$true] %s84_s27 }
   0xc   :  { %90 = dma.hbm_to_vmem [thread:$0]  %s83_s23, 16384, %s85_s27, [#allocation12], %s4912_s17, %s4912_s17, %s4913_s18  }
   0xd   :  { %s26_s28 = sshll.u32 %s4916_s3, 4  ;;  %s48_s10 = sshll.u32 %s5098_s2, 4  ;;  %s27_s28 = int_to_ptr.vmem [resolvable:$true] %s26_s28  ;;  %s49_s10 = int_to_ptr.hbm [resolvable:$true] %s48_s10 }
   0xe   :  { %29 = dma.hbm_to_vmem [thread:$0]  %s25_s25, 128, %s27_s28, [#allocation3]  }
   0xf   :  { %s72_s12 = sshll.u32 %s5100_s4, 4  ;;  %s4917_s13 = smov [#allocation7]   ;;  %s73_s12 = int_to_ptr.hbm [resolvable:$true] %s72_s12 }
  0x10   :  { %s50_s0 = sshll.u32 %s4917_s13, 4  ;;  %s4918_s14 = smov [#allocation10]   ;;  %s51_s0 = int_to_ptr.vmem [resolvable:$true] %s50_s0 }
  0x11   :  { %53 = dma.hbm_to_vmem [thread:$0]  %s49_s10, 64, %s51_s0, [#allocation6]  }
  0x12   :  { %s74_s15 = sshll.u32 %s4918_s14, 4  ;;  %s97_s18 = sshll.u32 %s5103_s7, 4  ;;  %s75_s15 = int_to_ptr.vmem [resolvable:$true] %s74_s15  ;;  %s98_s18 = int_to_ptr.hbm [resolvable:$true] %s97_s18 }
  0x13   :  { %77 = dma.hbm_to_vmem [thread:$0]  %s73_s12, 64, %s75_s15, [#allocation9]  }
  0x14   :  { %s4919_s2 = smov [#allocation13]   ;;  %s4920_s20 = smov 128  }
  0x15   :  { %s99_s19 = sshll.u32 %s4919_s2, 4  ;;  %s4921_s21 = smov 8   ;;  %s100_s19 = int_to_ptr.vmem [resolvable:$true] %s99_s19 }
  0x16   :  { %105 = dma.hbm_to_vmem [thread:$0]  %s98_s18, 8192, %s100_s19, [#allocation12], %s4920_s20, %s4920_s20, %s4921_s21  }
  0x17   :  { %4901 = dma.done.wait [#allocation3], 128  }
  0x18   :  { %4902 = vsyncadd [#allocation3], 4294967168 }
  0x19   :  { %4903 = dma.done.wait [#allocation6], 4160  }
  0x1a   :  { %4904 = vsyncadd [#allocation6], 4294963136 }
  0x1b   :  { %4905 = dma.done.wait [#allocation9], 16448  }
  0x1c   :  { %4906 = vsyncadd [#allocation9], 4294950848 }
  0x1d   :  { %4907 = dma.done.wait [#allocation12], 24576  }
  0x1e   :  { %4908 = vsyncadd [#allocation12], 4294942720  ;;  %v3045_v0 = vld [vmem:[#allocation5 + $0xe0] sm:$0xf]  ;;  %v4369_v1 = vld [vmem:[#allocation5 + $0xec] sm:$0xf0] }
  0x1f   :  { %v4367_v2 = vld [vmem:[#allocation5 + $0xe4] sm:$0xf]  ;;  %v3046_v3 = vor.u32 %v4369_v1, %v3045_v0  ;;  %v3047_v4 = vld [vmem:[#allocation5 + $0xf0] sm:$0xf0]  ;;  %v3053_v5 = vld [vmem:[#allocation5 + $0xe8] sm:$0xf] }
  0x20   :  { %v4370_v6 = vld [vmem:[#allocation5 + $0xf4] sm:$0xf0]  ;;  %v3050_v7 = vor.u32 %v4367_v2, %v3047_v4  ;;  %v4368_v9 = vld [vmem:[#allocation5 + $0xec] sm:$0xf]  ;;  %v3055_v10 = vld [vmem:[#allocation5 + $0xf8] sm:$0xf0] }
  0x21   :  { %v3054_v8 = vor.u32 %v4370_v6, %v3053_v5  ;;  %v3029_v11 = vld [vmem:[#allocation5 + $0xc0] sm:$0xf]  ;;  %340 = vmatpush.bf16.msra.mxu0 %v3046_v3  ;;  %v3058_v12 = vor.u32 %v4368_v9, %v3055_v10  ;;  %v4365_v13 = vld [vmem:[#allocation5 + $0xcc] sm:$0xf0]  ;;  %v4363_v14 = vld [vmem:[#allocation5 + $0xc4] sm:$0xf] }
  0x22   :  { %v3031_v15 = vld [vmem:[#allocation5 + $0xd0] sm:$0xf0]  ;;  %353 = vmatpush.bf16.msra.mxu1 %v3050_v7  ;;  %v3030_v16 = vor.u32 %v4365_v13, %v3029_v11  ;;  %v3037_v18 = vld [vmem:[#allocation5 + $0xc8] sm:$0xf]  ;;  %v4366_v19 = vld [vmem:[#allocation5 + $0xd4] sm:$0xf0] }
  0x23   :  { %366 = vmatpush.bf16.msra.mxu2 %v3054_v8  ;;  %v3034_v17 = vor.u32 %v4363_v14, %v3031_v15  ;;  %v4364_v20 = vld [vmem:[#allocation5 + $0xcc] sm:$0xf]  ;;  %379 = vmatpush.bf16.msra.mxu3 %v3058_v12  ;;  %v3038_v21 = vor.u32 %v4366_v19, %v3037_v18  ;;  %v3039_v22 = vld [vmem:[#allocation5 + $0xd8] sm:$0xf0]  ;;  %v3013_v23 = vld [vmem:[#allocation5 + $0xa0] sm:$0xf] }
  0x24   :  { %v4361_v24 = vld [vmem:[#allocation5 + $0xac] sm:$0xf0]  ;;  %v3042_v25 = vor.u32 %v4364_v20, %v3039_v22  ;;  %v4359_v26 = vld [vmem:[#allocation5 + $0xa4] sm:$0xf]  ;;  %v3015_v27 = vld [vmem:[#allocation5 + $0xb0] sm:$0xf0] }
  0x25   :  { %v3021_v28 = vld [vmem:[#allocation5 + $0xa8] sm:$0xf]  ;;  %341 = vmatpush.bf16.msra.mxu0 %v3030_v16  ;;  %v3014_v29 = vor.u32 %v4361_v24, %v3013_v23  ;;  %v4362_v30 = vld [vmem:[#allocation5 + $0xb4] sm:$0xf0]  ;;  %v4360_v31 = vld [vmem:[#allocation5 + $0xac] sm:$0xf]  ;;  %v3018_v33 = vor.u32 %v4359_v26, %v3015_v27 }
  0x26   :  { %v3023_v32 = vld [vmem:[#allocation5 + $0xb8] sm:$0xf0]  ;;  %354 = vmatpush.bf16.msra.mxu1 %v3034_v17  ;;  %v3022_v34 = vor.u32 %v4362_v30, %v3021_v28  ;;  %v2997_v35 = vld [vmem:[#allocation5 + $0x80] sm:$0xf]  ;;  %v4357_v36 = vld [vmem:[#allocation5 + $0x8c] sm:$0xf0] }
  0x27   :  { %367 = vmatpush.bf16.msra.mxu2 %v3038_v21  ;;  %v4355_v37 = vld [vmem:[#allocation5 + $0x84] sm:$0xf]  ;;  %380 = vmatpush.bf16.msra.mxu3 %v3042_v25  ;;  %v3026_v38 = vor.u32 %v4360_v31, %v3023_v32  ;;  %v2999_v39 = vld [vmem:[#allocation5 + $0x90] sm:$0xf0]  ;;  %v3005_v40 = vld [vmem:[#allocation5 + $0x88] sm:$0xf]  ;;  %v2998_v44 = vor.u32 %v4357_v36, %v2997_v35 }
  0x28   :  { %v4358_v41 = vld [vmem:[#allocation5 + $0x94] sm:$0xf0]  ;;  %v4356_v42 = vld [vmem:[#allocation5 + $0x8c] sm:$0xf]  ;;  %v3007_v43 = vld [vmem:[#allocation5 + $0x98] sm:$0xf0]  ;;  %v3002_v45 = vor.u32 %v4355_v37, %v2999_v39 }
  0x29   :  { %342 = vmatpush.bf16.msra.mxu0 %v3014_v29  ;;  %v3006_v46 = vor.u32 %v4358_v41, %v3005_v40  ;;  %v2981_v47 = vld [vmem:[#allocation5 + $0x60] sm:$0xf]  ;;  %v4353_v48 = vld [vmem:[#allocation5 + $0x6c] sm:$0xf0]  ;;  %v4351_v49 = vld [vmem:[#allocation5 + $0x64] sm:$0xf]  ;;  %v3010_v50 = vor.u32 %v4356_v42, %v3007_v43 }
  0x2a   :  { %355 = vmatpush.bf16.msra.mxu1 %v3018_v33  ;;  %v2983_v51 = vld [vmem:[#allocation5 + $0x70] sm:$0xf0]  ;;  %v2989_v52 = vld [vmem:[#allocation5 + $0x68] sm:$0xf]  ;;  %v4354_v53 = vld [vmem:[#allocation5 + $0x74] sm:$0xf0]  ;;  %v2982_v56 = vor.u32 %v4353_v48, %v2981_v47 }
  0x2b   :  { %368 = vmatpush.bf16.msra.mxu2 %v3022_v34  ;;  %381 = vmatpush.bf16.msra.mxu3 %v3026_v38  ;;  %v4352_v54 = vld [vmem:[#allocation5 + $0x6c] sm:$0xf]  ;;  %v2991_v55 = vld [vmem:[#allocation5 + $0x78] sm:$0xf0]  ;;  %v2986_v57 = vor.u32 %v4351_v49, %v2983_v51  ;;  %v2990_v58 = vor.u32 %v4354_v53, %v2989_v52  ;;  %v2965_v59 = vld [vmem:[#allocation5 + $0x40] sm:$0xf] }
  0x2c   :  { %v4349_v60 = vld [vmem:[#allocation5 + $0x4c] sm:$0xf0]  ;;  %v4347_v61 = vld [vmem:[#allocation5 + $0x44] sm:$0xf]  ;;  %v2994_v62 = vor.u32 %v4352_v54, %v2991_v55  ;;  %v2967_v63 = vld [vmem:[#allocation5 + $0x50] sm:$0xf0] }
  0x2d   :  { %343 = vmatpush.bf16.msra.mxu0 %v2998_v44  ;;  %v2973_v0 = vld [vmem:[#allocation5 + $0x48] sm:$0xf]  ;;  %v4350_v1 = vld [vmem:[#allocation5 + $0x54] sm:$0xf0]  ;;  %v4348_v2 = vld [vmem:[#allocation5 + $0x4c] sm:$0xf]  ;;  %v2966_v4 = vor.u32 %v4349_v60, %v2965_v59  ;;  %v2970_v5 = vor.u32 %v4347_v61, %v2967_v63 }
  0x2e   :  { %356 = vmatpush.bf16.msra.mxu1 %v3002_v45  ;;  %v2975_v3 = vld [vmem:[#allocation5 + $0x58] sm:$0xf0]  ;;  %v2974_v6 = vor.u32 %v4350_v1, %v2973_v0  ;;  %v2949_v7 = vld [vmem:[#allocation5 + $0x20] sm:$0xf]  ;;  %v4345_v8 = vld [vmem:[#allocation5 + $0x2c] sm:$0xf0] }
  0x2f   :  { %369 = vmatpush.bf16.msra.mxu2 %v3006_v46  ;;  %382 = vmatpush.bf16.msra.mxu3 %v3010_v50  ;;  %v4343_v9 = vld [vmem:[#allocation5 + $0x24] sm:$0xf]  ;;  %v2978_v10 = vor.u32 %v4348_v2, %v2975_v3  ;;  %v2951_v11 = vld [vmem:[#allocation5 + $0x30] sm:$0xf0]  ;;  %v2957_v12 = vld [vmem:[#allocation5 + $0x28] sm:$0xf]  ;;  %v2950_v16 = vor.u32 %v4345_v8, %v2949_v7 }
  0x30   :  { %v4346_v13 = vld [vmem:[#allocation5 + $0x34] sm:$0xf0]  ;;  %v4344_v14 = vld [vmem:[#allocation5 + $0x2c] sm:$0xf]  ;;  %v2959_v15 = vld [vmem:[#allocation5 + $0x38] sm:$0xf0]  ;;  %v2954_v18 = vor.u32 %v4343_v9, %v2951_v11 }
  0x31   :  { %344 = vmatpush.bf16.msra.mxu0 %v2982_v56  ;;  %v2933_v17 = vld [vmem:[#allocation5] sm:$0xf]  ;;  %v2958_v19 = vor.u32 %v4346_v13, %v2957_v12  ;;  %v4341_v20 = vld [vmem:[#allocation5 + $0xc] sm:$0xf0]  ;;  %v4339_v21 = vld [vmem:[#allocation5 + $0x4] sm:$0xf]  ;;  %v2962_v23 = vor.u32 %v4344_v14, %v2959_v15 }
  0x32   :  { %357 = vmatpush.bf16.msra.mxu1 %v2986_v57  ;;  %v2935_v22 = vld [vmem:[#allocation5 + $0x10] sm:$0xf0]  ;;  %v2941_v24 = vld [vmem:[#allocation5 + $0x8] sm:$0xf]  ;;  %v4342_v25 = vld [vmem:[#allocation5 + $0x14] sm:$0xf0]  ;;  %v2934_v30 = vor.u32 %v4341_v20, %v2933_v17 }
  0x33   :  { %370 = vmatpush.bf16.msra.mxu2 %v2990_v58  ;;  %383 = vmatpush.bf16.msra.mxu3 %v2994_v62  ;;  %v4340_v26 = vld [vmem:[#allocation5 + $0xc] sm:$0xf]  ;;  %v2943_v27 = vld [vmem:[#allocation5 + $0x18] sm:$0xf0]  ;;  %v3173_v28 = vld [vmem:[#allocation8 + $0xe0] sm:$0xf]  ;;  %v2938_v34 = vor.u32 %v4339_v21, %v2935_v22  ;;  %v2942_v35 = vor.u32 %v4342_v25, %v2941_v24 }
  0x34   :  { %v4401_v29 = vld [vmem:[#allocation8 + $0xec] sm:$0xf0]  ;;  %v136_v31 = vld [vmem:[#allocation2] sm:$0xff]  ;;  %v3301_v32 = vld [vmem:[#allocation8 + $0x1e0] sm:$0xf]  ;;  %v2946_v36 = vor.u32 %v4340_v26, %v2943_v27  ;;  %s2918_s25 = sshll.u32 %s5105_s9, 4  ;;  %s2919_s25 = int_to_ptr.hbm [resolvable:$true] %s2918_s25 }
  0x35   :  { %345 = vmatpush.bf16.msra.mxu0 %v2966_v4  ;;  %v4433_v33 = vld [vmem:[#allocation8 + $0x1ec] sm:$0xf0]  ;;  %v3174_v37 = vor.u32 %v4401_v29, %v3173_v28  ;;  %v3157_v38 = vld [vmem:[#allocation8 + $0xc0] sm:$0xf]  ;;  %v137_v41 = vpack.c.bf16 %v136_v31, %v136_v31 }
  0x36   :  { %358 = vmatpush.bf16.msra.mxu1 %v2970_v5  ;;  %v3429_v39 = vld [vmem:[#allocation8 + $0x2e0] sm:$0xf]  ;;  %v4465_v40 = vld [vmem:[#allocation8 + $0x2ec] sm:$0xf0]  ;;  %v3302_v42 = vor.u32 %v4433_v33, %v3301_v32 }
  0x37   :  { %371 = vmatpush.bf16.msra.mxu2 %v2974_v6  ;;  %384 = vmatpush.bf16.msra.mxu3 %v2978_v10  ;;  %v4397_v43 = vld [vmem:[#allocation8 + $0xcc] sm:$0xf0]  ;;  %v3557_v44 = vld [vmem:[#allocation8 + $0x3e0] sm:$0xf]  ;;  %v3430_v48 = vor.u32 %v4465_v40, %v3429_v39 }
  0x38   :  { %v4497_v45 = vld [vmem:[#allocation8 + $0x3ec] sm:$0xf0]  ;;  %v3285_v46 = vld [vmem:[#allocation8 + $0x1c0] sm:$0xf]  ;;  %v3158_v49 = vor.u32 %v4397_v43, %v3157_v38 }
  0x39   :  { %346 = vmatpush.bf16.msra.mxu0 %v2950_v16  ;;  %v4429_v47 = vld [vmem:[#allocation8 + $0x1cc] sm:$0xf0]  ;;  %v3558_v50 = vor.u32 %v4497_v45, %v3557_v44  ;;  %v3141_v51 = vld [vmem:[#allocation8 + $0xa0] sm:$0xf] }
  0x3a   :  { %359 = vmatpush.bf16.msra.mxu1 %v2954_v18  ;;  %v3413_v52 = vld [vmem:[#allocation8 + $0x2c0] sm:$0xf]  ;;  %v4461_v53 = vld [vmem:[#allocation8 + $0x2cc] sm:$0xf0]  ;;  %v3286_v54 = vor.u32 %v4429_v47, %v3285_v46 }
  0x3b   :  { %372 = vmatpush.bf16.msra.mxu2 %v2958_v19  ;;  %385 = vmatpush.bf16.msra.mxu3 %v2962_v23  ;;  %v4393_v55 = vld [vmem:[#allocation8 + $0xac] sm:$0xf0]  ;;  %v3541_v56 = vld [vmem:[#allocation8 + $0x3c0] sm:$0xf]  ;;  %v3414_v60 = vor.u32 %v4461_v53, %v3413_v52 }
  0x3c   :  { %v4493_v57 = vld [vmem:[#allocation8 + $0x3cc] sm:$0xf0]  ;;  %v3269_v58 = vld [vmem:[#allocation8 + $0x1a0] sm:$0xf]  ;;  %v3142_v61 = vor.u32 %v4393_v55, %v3141_v51 }
  0x3d   :  { %347 = vmatpush.bf16.msra.mxu0 %v2934_v30  ;;  %v4425_v59 = vld [vmem:[#allocation8 + $0x1ac] sm:$0xf0]  ;;  %v3542_v62 = vor.u32 %v4493_v57, %v3541_v56  ;;  %v3125_v63 = vld [vmem:[#allocation8 + $0x80] sm:$0xf]  ;;  %v4399_v56 = vld [vmem:[#allocation8 + $0xe4] sm:$0xf] }
  0x3e   :  { %360 = vmatpush.bf16.msra.mxu1 %v2938_v34  ;;  %v3397_v0 = vld [vmem:[#allocation8 + $0x2a0] sm:$0xf]  ;;  %v4457_v1 = vld [vmem:[#allocation8 + $0x2ac] sm:$0xf0]  ;;  %v3270_v2 = vor.u32 %v4425_v59, %v3269_v58  ;;  %v3175_v57 = vld [vmem:[#allocation8 + $0xf0] sm:$0xf0] }
  0x3f   :  { %373 = vmatpush.bf16.msra.mxu2 %v2942_v35  ;;  %386 = vmatpush.bf16.msra.mxu3 %v2946_v36  ;;  %v4389_v3 = vld [vmem:[#allocation8 + $0x8c] sm:$0xf0]  ;;  %v3525_v4 = vld [vmem:[#allocation8 + $0x3a0] sm:$0xf]  ;;  %v3398_v8 = vor.u32 %v4457_v1, %v3397_v0  ;;  %v4431_v58 = vld [vmem:[#allocation8 + $0x1e4] sm:$0xf] }
  0x40   :  { %348 = vmatmul.bf16.vlgmr.msra.gmra.mxu0 %v137_v41  ;;  %v4489_v5 = vld [vmem:[#allocation8 + $0x3ac] sm:$0xf0]  ;;  %v3253_v6 = vld [vmem:[#allocation8 + $0x180] sm:$0xf]  ;;  %v3126_v9 = vor.u32 %v4389_v3, %v3125_v63  ;;  %v3303_v59 = vld [vmem:[#allocation8 + $0x1f0] sm:$0xf0] }
  0x41   :  { %1182 = vmatpush.bf16.msrb.mxu0 %v3174_v37  ;;  %361 = vmatmul.bf16.vlgmr.msra.gmra.mxu1 %v137_v41  ;;  %v4421_v7 = vld [vmem:[#allocation8 + $0x18c] sm:$0xf0]  ;;  %v3526_v10 = vor.u32 %v4489_v5, %v3525_v4  ;;  %v3109_v11 = vld [vmem:[#allocation8 + $0x60] sm:$0xf]  ;;  %v4395_v63 = vld [vmem:[#allocation8 + $0xc4] sm:$0xf]  ;;  %v3178_v4 = vor.u32 %v4399_v56, %v3175_v57 }
  0x42   :  { %1195 = vmatpush.bf16.msrb.mxu1 %v3302_v42  ;;  %374 = vmatmul.bf16.vlgmr.msra.gmra.mxu2 %v137_v41  ;;  %v3381_v12 = vld [vmem:[#allocation8 + $0x280] sm:$0xf]  ;;  %v4453_v13 = vld [vmem:[#allocation8 + $0x28c] sm:$0xf0]  ;;  %v3254_v14 = vor.u32 %v4421_v7, %v3253_v6  ;;  %v4463_v6 = vld [vmem:[#allocation8 + $0x2e4] sm:$0xf] }
  0x43   :  { %387 = vmatmul.bf16.vlgmr.msra.gmra.mxu3 %v137_v41  ;;  %1208 = vmatpush.bf16.msrb.mxu2 %v3430_v48  ;;  %v4385_v15 = vld [vmem:[#allocation8 + $0x6c] sm:$0xf0]  ;;  %v3509_v16 = vld [vmem:[#allocation8 + $0x380] sm:$0xf]  ;;  %v3382_v20 = vor.u32 %v4453_v13, %v3381_v12  ;;  %v3431_v7 = vld [vmem:[#allocation8 + $0x2f0] sm:$0xf0] }
  0x44   :  { %1221 = vmatpush.bf16.msrb.mxu3 %v3558_v50  ;;  %v4485_v17 = vld [vmem:[#allocation8 + $0x38c] sm:$0xf0]  ;;  %v3237_v18 = vld [vmem:[#allocation8 + $0x160] sm:$0xf]  ;;  %v3110_v21 = vor.u32 %v4385_v15, %v3109_v11  ;;  %v3559_v11 = vld [vmem:[#allocation8 + $0x3f0] sm:$0xf0] }
  0x45   :  { %1183 = vmatpush.bf16.msrb.mxu0 %v3158_v49  ;;  %v4417_v19 = vld [vmem:[#allocation8 + $0x16c] sm:$0xf0]  ;;  %v3510_v22 = vor.u32 %v4485_v17, %v3509_v16  ;;  %v3093_v23 = vld [vmem:[#allocation8 + $0x40] sm:$0xf]  ;;  %v4427_v12 = vld [vmem:[#allocation8 + $0x1c4] sm:$0xf]  ;;  %v3434_v16 = vor.u32 %v4463_v6, %v3431_v7 }
  0x46   :  { %1196 = vmatpush.bf16.msrb.mxu1 %v3286_v54  ;;  %v3365_v24 = vld [vmem:[#allocation8 + $0x260] sm:$0xf]  ;;  %v4449_v25 = vld [vmem:[#allocation8 + $0x26c] sm:$0xf0]  ;;  %v3238_v26 = vor.u32 %v4417_v19, %v3237_v18  ;;  %v3287_v13 = vld [vmem:[#allocation8 + $0x1d0] sm:$0xf0] }
  0x47   :  { %1209 = vmatpush.bf16.msrb.mxu2 %v3414_v60  ;;  %v4381_v27 = vld [vmem:[#allocation8 + $0x4c] sm:$0xf0]  ;;  %v3493_v28 = vld [vmem:[#allocation8 + $0x360] sm:$0xf]  ;;  %v3366_v32 = vor.u32 %v4449_v25, %v3365_v24  ;;  %v4391_v19 = vld [vmem:[#allocation8 + $0xa4] sm:$0xf] }
  0x48   :  { %1222 = vmatpush.bf16.msrb.mxu3 %v3542_v62  ;;  %v4481_v29 = vld [vmem:[#allocation8 + $0x36c] sm:$0xf0]  ;;  %v3221_v30 = vld [vmem:[#allocation8 + $0x140] sm:$0xf]  ;;  %v3094_v33 = vor.u32 %v4381_v27, %v3093_v23  ;;  %v3143_v23 = vld [vmem:[#allocation8 + $0xb0] sm:$0xf0] }
  0x49   :  { %1184 = vmatpush.bf16.msrb.mxu0 %v3142_v61  ;;  %v4413_v31 = vld [vmem:[#allocation8 + $0x14c] sm:$0xf0]  ;;  %v3494_v34 = vor.u32 %v4481_v29, %v3493_v28  ;;  %v3077_v35 = vld [vmem:[#allocation8 + $0x20] sm:$0xf]  ;;  %v4491_v24 = vld [vmem:[#allocation8 + $0x3c4] sm:$0xf]  ;;  %v3146_v29 = vor.u32 %v4391_v19, %v3143_v23 }
  0x4a   :  { %1197 = vmatpush.bf16.msrb.mxu1 %v3270_v2  ;;  %v3349_v36 = vld [vmem:[#allocation8 + $0x240] sm:$0xf]  ;;  %v4445_v37 = vld [vmem:[#allocation8 + $0x24c] sm:$0xf0]  ;;  %v3222_v38 = vor.u32 %v4413_v31, %v3221_v30  ;;  %v3543_v25 = vld [vmem:[#allocation8 + $0x3d0] sm:$0xf0] }
  0x4b   :  { %1210 = vmatpush.bf16.msrb.mxu2 %v3398_v8  ;;  %v4377_v39 = vld [vmem:[#allocation8 + $0x2c] sm:$0xf0]  ;;  %v3477_v40 = vld [vmem:[#allocation8 + $0x340] sm:$0xf]  ;;  %v3350_v44 = vor.u32 %v4445_v37, %v3349_v36  ;;  %v3306_v8 = vor.u32 %v4431_v58, %v3303_v59  ;;  %v3271_v27 = vld [vmem:[#allocation8 + $0x1b0] sm:$0xf0]  ;;  %v3546_v30 = vor.u32 %v4491_v24, %v3543_v25 }
  0x4c   :  { %1223 = vmatpush.bf16.msrb.mxu3 %v3526_v10  ;;  %v4477_v41 = vld [vmem:[#allocation8 + $0x34c] sm:$0xf0]  ;;  %v3205_v42 = vld [vmem:[#allocation8 + $0x120] sm:$0xf]  ;;  %v3078_v46 = vor.u32 %v4377_v39, %v3077_v35  ;;  %v4495_v10 = vld [vmem:[#allocation8 + $0x3e4] sm:$0xf] }
  0x4d   :  { %1185 = vmatpush.bf16.msrb.mxu0 %v3126_v9  ;;  %v4409_v43 = vld [vmem:[#allocation8 + $0x12c] sm:$0xf0]  ;;  %v3061_v45 = vld [vmem:[#allocation8] sm:$0xf]  ;;  %v3478_v47 = vor.u32 %v4477_v41, %v3477_v40  ;;  %v3159_v9 = vld [vmem:[#allocation8 + $0xd0] sm:$0xf0]  ;;  %v3562_v18 = vor.u32 %v4495_v10, %v3559_v11 }
  0x4e   :  { %1198 = vmatpush.bf16.msrb.mxu1 %v3254_v14  ;;  %v4373_v48 = vld [vmem:[#allocation8 + $0xc] sm:$0xf0]  ;;  %v3333_v49 = vld [vmem:[#allocation8 + $0x220] sm:$0xf]  ;;  %v3206_v51 = vor.u32 %v4409_v43, %v3205_v42  ;;  %v3162_v17 = vor.u32 %v4395_v63, %v3159_v9  ;;  %v4387_v31 = vld [vmem:[#allocation8 + $0x84] sm:$0xf] }
  0x4f   :  { %1211 = vmatpush.bf16.msrb.mxu2 %v3382_v20  ;;  %v4441_v50 = vld [vmem:[#allocation8 + $0x22c] sm:$0xf0]  ;;  %v3189_v52 = vld [vmem:[#allocation8 + $0x100] sm:$0xf]  ;;  %v3062_v61 = vor.u32 %v4373_v48, %v3061_v45  ;;  %v4459_v20 = vld [vmem:[#allocation8 + $0x2c4] sm:$0xf] }
  0x50   :  { %1224 = vmatpush.bf16.msrb.mxu3 %v3510_v22  ;;  %v3461_v53 = vld [vmem:[#allocation8 + $0x320] sm:$0xf]  ;;  %v4473_v54 = vld [vmem:[#allocation8 + $0x32c] sm:$0xf0]  ;;  %v3334_v60 = vor.u32 %v4441_v50, %v3333_v49  ;;  %v3290_v22 = vor.u32 %v4427_v12, %v3287_v13  ;;  %v3127_v35 = vld [vmem:[#allocation8 + $0x90] sm:$0xf0] }
  0x51   :  { %1186 = vmatpush.bf16.msrb.mxu0 %v3110_v21  ;;  %v4405_v55 = vld [vmem:[#allocation8 + $0x10c] sm:$0xf0]  ;;  %v3462_v62 = vor.u32 %v4473_v54, %v3461_v53  ;;  %v3317_v0 = vld [vmem:[#allocation8 + $0x200] sm:$0xf]  ;;  %v3415_v21 = vld [vmem:[#allocation8 + $0x2d0] sm:$0xf0]  ;;  %v3130_v41 = vor.u32 %v4387_v31, %v3127_v35 }
  0x52   :  { %1199 = vmatpush.bf16.msrb.mxu1 %v3238_v26  ;;  %v4437_v1 = vld [vmem:[#allocation8 + $0x20c] sm:$0xf0]  ;;  %v3445_v2 = vld [vmem:[#allocation8 + $0x300] sm:$0xf]  ;;  %v3190_v3 = vor.u32 %v4405_v55, %v3189_v52  ;;  %v4423_v26 = vld [vmem:[#allocation8 + $0x1a4] sm:$0xf]  ;;  %v3418_v28 = vor.u32 %v4459_v20, %v3415_v21 }
  0x53   :  { %1212 = vmatpush.bf16.msrb.mxu2 %v3366_v32  ;;  %v4469_v5 = vld [vmem:[#allocation8 + $0x30c] sm:$0xf0]  ;;  %v3318_v14 = vor.u32 %v4437_v1, %v3317_v0  ;;  %v4455_v32 = vld [vmem:[#allocation8 + $0x2a4] sm:$0xf]  ;;  %v3527_v37 = vld [vmem:[#allocation8 + $0x3b0] sm:$0xf0] }
  0x54   :  { %1225 = vmatpush.bf16.msrb.mxu3 %v3494_v34  ;;  %v3446_v15 = vor.u32 %v4469_v5, %v3445_v2  ;;  %v3274_v34 = vor.u32 %v4423_v26, %v3271_v27  ;;  %v4487_v36 = vld [vmem:[#allocation8 + $0x3a4] sm:$0xf]  ;;  %v3255_v39 = vld [vmem:[#allocation8 + $0x190] sm:$0xf0] }
  0x55   :  { %1187 = vmatpush.bf16.msrb.mxu0 %v3094_v33  ;;  %v3399_v33 = vld [vmem:[#allocation8 + $0x2b0] sm:$0xf0]  ;;  %v3530_v42 = vor.u32 %v4487_v36, %v3527_v37  ;;  %v4383_v43 = vld [vmem:[#allocation8 + $0x64] sm:$0xf] }
  0x56   :  { %1200 = vmatpush.bf16.msrb.mxu1 %v3222_v38  ;;  %v4419_v38 = vld [vmem:[#allocation8 + $0x184] sm:$0xf]  ;;  %v3402_v40 = vor.u32 %v4455_v32, %v3399_v33  ;;  %v3383_v45 = vld [vmem:[#allocation8 + $0x290] sm:$0xf0] }
  0x57   :  { %1213 = vmatpush.bf16.msrb.mxu2 %v3350_v44  ;;  %v4451_v44 = vld [vmem:[#allocation8 + $0x284] sm:$0xf]  ;;  %v3511_v49 = vld [vmem:[#allocation8 + $0x390] sm:$0xf0] }
  0x58   :  { %1226 = vmatpush.bf16.msrb.mxu3 %v3478_v47  ;;  %v3111_v47 = vld [vmem:[#allocation8 + $0x70] sm:$0xf0]  ;;  %v4483_v48 = vld [vmem:[#allocation8 + $0x384] sm:$0xf]  ;;  %v3386_v52 = vor.u32 %v4451_v44, %v3383_v45  ;;  %v4402_v44 = vld [vmem:[#allocation8 + $0xf4] sm:$0xf0] }
  0x59   :  { %1188 = vmatpush.bf16.msrb.mxu0 %v3078_v46  ;;  %v3258_v46 = vor.u32 %v4419_v38, %v3255_v39  ;;  %v4415_v50 = vld [vmem:[#allocation8 + $0x164] sm:$0xf]  ;;  %v3114_v53 = vor.u32 %v4383_v43, %v3111_v47  ;;  %v3514_v54 = vor.u32 %v4483_v48, %v3511_v49  ;;  %v3095_v57 = vld [vmem:[#allocation8 + $0x50] sm:$0xf0]  ;;  %v3181_v43 = vld [vmem:[#allocation8 + $0xe8] sm:$0xf] }
  0x5a   :  { %1201 = vmatpush.bf16.msrb.mxu1 %v3206_v51  ;;  %v3239_v51 = vld [vmem:[#allocation8 + $0x170] sm:$0xf0]  ;;  %v4379_v56 = vld [vmem:[#allocation8 + $0x44] sm:$0xf]  ;;  %v4434_v47 = vld [vmem:[#allocation8 + $0x1f4] sm:$0xf0] }
  0x5b   :  { %1214 = vmatpush.bf16.msrb.mxu2 %v3334_v60  ;;  %v3242_v55 = vor.u32 %v4415_v50, %v3239_v51  ;;  %v4411_v58 = vld [vmem:[#allocation8 + $0x144] sm:$0xf]  ;;  %v3098_v59 = vor.u32 %v4379_v56, %v3095_v57  ;;  %v3223_v60 = vld [vmem:[#allocation8 + $0x150] sm:$0xf0]  ;;  %v3182_v51 = vor.u32 %v4402_v44, %v3181_v43  ;;  %v4398_v56 = vld [vmem:[#allocation8 + $0xd4] sm:$0xf0] }
  0x5c   :  { %1227 = vmatpush.bf16.msrb.mxu3 %v3462_v62  ;;  %v4447_v62 = vld [vmem:[#allocation8 + $0x264] sm:$0xf]  ;;  %v3367_v63 = vld [vmem:[#allocation8 + $0x270] sm:$0xf0] }
  0x5d   :  { %1189 = vmatpush.bf16.msrb.mxu0 %v3062_v61  ;;  %v3226_v61 = vor.u32 %v4411_v58, %v3223_v60  ;;  %v3370_v0 = vor.u32 %v4447_v62, %v3367_v63  ;;  %v4479_v1 = vld [vmem:[#allocation8 + $0x364] sm:$0xf]  ;;  %v3495_v2 = vld [vmem:[#allocation8 + $0x370] sm:$0xf0]  ;;  %v4430_v62 = vld [vmem:[#allocation8 + $0x1d4] sm:$0xf0] }
  0x5e   :  { %1202 = vmatpush.bf16.msrb.mxu1 %v3190_v3  ;;  %v3498_v3 = vor.u32 %v4479_v1, %v3495_v2  ;;  %v3079_v5 = vld [vmem:[#allocation8 + $0x30] sm:$0xf0]  ;;  %v4407_v6 = vld [vmem:[#allocation8 + $0x124] sm:$0xf]  ;;  %v3437_v1 = vld [vmem:[#allocation8 + $0x2e8] sm:$0xf] }
  0x5f   :  { %1215 = vmatpush.bf16.msrb.mxu2 %v3318_v14  ;;  %v4443_v10 = vld [vmem:[#allocation8 + $0x244] sm:$0xf]  ;;  %v3351_v11 = vld [vmem:[#allocation8 + $0x250] sm:$0xf0]  ;;  %v4466_v2 = vld [vmem:[#allocation8 + $0x2f4] sm:$0xf0] }
  0x60   :  { %1228 = vmatpush.bf16.msrb.mxu3 %v3446_v15  ;;  %v4475_v12 = vld [vmem:[#allocation8 + $0x344] sm:$0xf]  ;;  %v3354_v13 = vor.u32 %v4443_v10, %v3351_v11  ;;  %v3479_v14 = vld [vmem:[#allocation8 + $0x350] sm:$0xf0]  ;;  %v4394_v10 = vld [vmem:[#allocation8 + $0xb4] sm:$0xf0] }
  0x61   :  { %1234 = vmatpush.bf16.msra.mxu0 %v3178_v4  ;;  %v4375_v4 = vld [vmem:[#allocation8 + $0x24] sm:$0xf]  ;;  %v3482_v15 = vor.u32 %v4475_v12, %v3479_v14  ;;  %v3191_v20 = vld [vmem:[#allocation8 + $0x110] sm:$0xf0]  ;;  %v3277_v12 = vld [vmem:[#allocation8 + $0x1a8] sm:$0xf] }
  0x62   :  { %1247 = vmatpush.bf16.msra.mxu1 %v3306_v8  ;;  %v3082_v7 = vor.u32 %v4375_v4, %v3079_v5  ;;  %v3207_v8 = vld [vmem:[#allocation8 + $0x130] sm:$0xf0]  ;;  %v4403_v19 = vld [vmem:[#allocation8 + $0x104] sm:$0xf]  ;;  %v3565_v5 = vld [vmem:[#allocation8 + $0x3e8] sm:$0xf] }
  0x63   :  { %1260 = vmatpush.bf16.msra.mxu2 %v3434_v16  ;;  %v3210_v9 = vor.u32 %v4407_v6, %v3207_v8  ;;  %v4371_v16 = vld [vmem:[#allocation8 + $0x4] sm:$0xf]  ;;  %v3194_v21 = vor.u32 %v4403_v19, %v3191_v20  ;;  %v3335_v23 = vld [vmem:[#allocation8 + $0x230] sm:$0xf0]  ;;  %v4498_v6 = vld [vmem:[#allocation8 + $0x3f4] sm:$0xf0] }
  0x64   :  { %1273 = vmatpush.bf16.msra.mxu3 %v3562_v18  ;;  %v4471_v24 = vld [vmem:[#allocation8 + $0x324] sm:$0xf]  ;;  %v3463_v26 = vld [vmem:[#allocation8 + $0x330] sm:$0xf0]  ;;  %v3421_v19 = vld [vmem:[#allocation8 + $0x2c8] sm:$0xf] }
  0x65   :  { %1235 = vmatpush.bf16.msra.mxu0 %v3162_v17  ;;  %v3063_v17 = vld [vmem:[#allocation8 + $0x10] sm:$0xf0]  ;;  %v3466_v27 = vor.u32 %v4471_v24, %v3463_v26  ;;  %v4467_v31 = vld [vmem:[#allocation8 + $0x304] sm:$0xf]  ;;  %v4462_v20 = vld [vmem:[#allocation8 + $0x2d4] sm:$0xf0] }
  0x66   :  { %1248 = vmatpush.bf16.msra.mxu1 %v3290_v22  ;;  %v3066_v18 = vor.u32 %v4371_v16, %v3063_v17  ;;  %v4439_v22 = vld [vmem:[#allocation8 + $0x224] sm:$0xf]  ;;  %v3447_v32 = vld [vmem:[#allocation8 + $0x310] sm:$0xf0]  ;;  %v3566_v17 = vor.u32 %v4498_v6, %v3565_v5  ;;  %v3133_v26 = vld [vmem:[#allocation8 + $0x88] sm:$0xf] }
  0x67   :  { %1261 = vmatpush.bf16.msra.mxu2 %v3418_v28  ;;  %v3338_v25 = vor.u32 %v4439_v22, %v3335_v23  ;;  %v4435_v28 = vld [vmem:[#allocation8 + $0x204] sm:$0xf]  ;;  %v3450_v33 = vor.u32 %v4467_v31, %v3447_v32  ;;  %v3422_v31 = vor.u32 %v4462_v20, %v3421_v19  ;;  %v3183_v20 = vld [vmem:[#allocation8 + $0xf8] sm:$0xf0] }
  0x68   :  { %1274 = vmatpush.bf16.msra.mxu3 %v3546_v30 }
  0x69   :  { %1236 = vmatpush.bf16.msra.mxu0 %v3146_v29  ;;  %v3319_v29 = vld [vmem:[#allocation8 + $0x210] sm:$0xf0] }
  0x6a   :  { %1249 = vmatpush.bf16.msra.mxu1 %v3274_v34  ;;  %v3322_v30 = vor.u32 %v4435_v28, %v3319_v29  ;;  %v170_v34 = vld [vmem:[#allocation7] sm:$0xf]  ;;  %v3261_v29 = vld [vmem:[#allocation8 + $0x188] sm:$0xf] }
  0x6b   :  { %1262 = vmatpush.bf16.msra.mxu2 %v3402_v40  ;;  %v172_v35 = vperm.slane %v170_v34, 0  ;;  %v173_v36 = vperm.slane %v170_v34, 1  ;;  %v175_v49 = vperm.slane %v170_v34, 3 }
  0x6c   :  { %1275 = vmatpush.bf16.msra.mxu3 %v3530_v42 }
  0x6d   :  { %1237 = vmatpush.bf16.msra.mxu0 %v3130_v41  ;;  %v174_v41 = vperm.slane %v170_v34, 2  ;;  %v3405_v34 = vld [vmem:[#allocation8 + $0x2a8] sm:$0xf] }
  0x6e   :  { %1250 = vmatpush.bf16.msra.mxu1 %v3258_v46  ;;  %v3309_v46 = vld [vmem:[#allocation8 + $0x1e8] sm:$0xf] }
  0x6f   :  { %1263 = vmatpush.bf16.msra.mxu2 %v3386_v52 }
  0x70   :  { %1276 = vmatpush.bf16.msra.mxu3 %v3514_v54  ;;  %v3310_v54 = vor.u32 %v4434_v47, %v3309_v46  ;;  %v4454_v46 = vld [vmem:[#allocation8 + $0x294] sm:$0xf0] }
  0x71   :  { %1238 = vmatpush.bf16.msra.mxu0 %v3114_v53 }
  0x72   :  { %1251 = vmatpush.bf16.msra.mxu1 %v3242_v55  ;;  %v3165_v55 = vld [vmem:[#allocation8 + $0xc8] sm:$0xf] }
  0x73   :  { %1264 = vmatpush.bf16.msra.mxu2 %v3370_v0  ;;  %v3166_v4 = vor.u32 %v4398_v56, %v3165_v55  ;;  %v4414_v55 = vld [vmem:[#allocation8 + $0x154] sm:$0xf0] }
  0x74   :  { %1277 = vmatpush.bf16.msra.mxu3 %v3498_v3 }
  0x75   :  { %1239 = vmatpush.bf16.msra.mxu0 %v3098_v59 }
  0x76   :  { %1252 = vmatpush.bf16.msra.mxu1 %v3226_v61  ;;  %v3293_v61 = vld [vmem:[#allocation8 + $0x1c8] sm:$0xf] }
  0x77   :  { %1265 = vmatpush.bf16.msra.mxu2 %v3354_v13  ;;  %v3294_v8 = vor.u32 %v4430_v62, %v3293_v61  ;;  %v4426_v13 = vld [vmem:[#allocation8 + $0x1b4] sm:$0xf0] }
  0x78   :  { %1278 = vmatpush.bf16.msra.mxu3 %v3482_v15  ;;  %v3438_v15 = vor.u32 %v4466_v2, %v3437_v1  ;;  %v3278_v24 = vor.u32 %v4426_v13, %v3277_v12  ;;  %v3085_v1 = vld [vmem:[#allocation8 + $0x28] sm:$0xf]  ;;  %v4378_v2 = vld [vmem:[#allocation8 + $0x34] sm:$0xf0] }
  0x79   :  { %1240 = vmatpush.bf16.msra.mxu0 %v3082_v7  ;;  %v4478_v12 = vld [vmem:[#allocation8 + $0x354] sm:$0xf0]  ;;  %v3069_v13 = vld [vmem:[#allocation8 + $0x8] sm:$0xf] }
  0x7a   :  { %1253 = vmatpush.bf16.msra.mxu1 %v3210_v9  ;;  %v3149_v9 = vld [vmem:[#allocation8 + $0xa8] sm:$0xf] }
  0x7b   :  { %1266 = vmatpush.bf16.msra.mxu2 %v3338_v25  ;;  %v4494_v25 = vld [vmem:[#allocation8 + $0x3d4] sm:$0xf0] }
  0x7c   :  { %1279 = vmatpush.bf16.msra.mxu3 %v3466_v27  ;;  %v4390_v27 = vld [vmem:[#allocation8 + $0x94] sm:$0xf0] }
  0x7d   :  { %1241 = vmatpush.bf16.msra.mxu0 %v3066_v18  ;;  %v3150_v18 = vor.u32 %v4394_v10, %v3149_v9  ;;  %v3485_v9 = vld [vmem:[#allocation8 + $0x348] sm:$0xf]  ;;  %v3086_v10 = vor.u32 %v4378_v2, %v3085_v1  ;;  %v4388_v1 = vld [vmem:[#allocation8 + $0x8c] sm:$0xf]  ;;  %v3135_v2 = vld [vmem:[#allocation8 + $0x98] sm:$0xf0] }
  0x7e   :  { %1254 = vmatpush.bf16.msra.mxu1 %v3194_v21  ;;  %v3549_v21 = vld [vmem:[#allocation8 + $0x3c8] sm:$0xf] }
  0x7f   :  { %1267 = vmatpush.bf16.msra.mxu2 %v3322_v30  ;;  %v4422_v30 = vld [vmem:[#allocation8 + $0x194] sm:$0xf0]  ;;  %v3550_v32 = vor.u32 %v4494_v25, %v3549_v21  ;;  %v4432_v21 = vld [vmem:[#allocation8 + $0x1ec] sm:$0xf]  ;;  %v3341_v25 = vld [vmem:[#allocation8 + $0x228] sm:$0xf] }
  0x80   :  { %1280 = vmatpush.bf16.msra.mxu3 %v3450_v33  ;;  %v3134_v33 = vor.u32 %v4390_v27, %v3133_v26  ;;  %v4442_v26 = vld [vmem:[#allocation8 + $0x234] sm:$0xf0] }
  0xbd   :  { %v349_v37 = vpop.f32.mrf.mxu0 }
  0xbe   :  { %v350_v38 = vadd.f32 %v349_v37, %v172_v35  ;;  %v362_v39 = vpop.f32.mrf.mxu1  ;;  %v4458_v35 = vld [vmem:[#allocation8 + $0x2b4] sm:$0xf0]  ;;  %v3533_v37 = vld [vmem:[#allocation8 + $0x3a8] sm:$0xf] }
  0xbf   :  { %v363_v40 = vadd.f32 %v362_v39, %v173_v36  ;;  %v3262_v36 = vor.u32 %v4422_v30, %v3261_v29  ;;  %v3117_v39 = vld [vmem:[#allocation8 + $0x68] sm:$0xf]  ;;  %v3406_v43 = vor.u32 %v4458_v35, %v3405_v34  ;;  %v4474_v30 = vld [vmem:[#allocation8 + $0x334] sm:$0xf0]  ;;  %v3342_v34 = vor.u32 %v4442_v26, %v3341_v25  ;;  %v3167_v35 = vld [vmem:[#allocation8 + $0xd8] sm:$0xf0] }
  0xc0   :  { %v392_v42 = vmul.f32 0.01, %v350_v38  ;;  %v3469_v29 = vld [vmem:[#allocation8 + $0x328] sm:$0xf]  ;;  %v4484_v25 = vld [vmem:[#allocation8 + $0x38c] sm:$0xf] }
  0xc1   :  { %v393_v45 = vmul.f32 0.01, %v363_v40  ;;  %v3519_v26 = vld [vmem:[#allocation8 + $0x398] sm:$0xf0] }
  0xc2   :  { %v396_v48 = vmax.f32 %v350_v38, %v392_v42  ;;  %v4490_v38 = vld [vmem:[#allocation8 + $0x3b4] sm:$0xf0] }
  0xc3   :  { %v397_v50 = vmax.f32 %v363_v40, %v393_v45  ;;  %v4386_v40 = vld [vmem:[#allocation8 + $0x74] sm:$0xf0]  ;;  %v3534_v44 = vor.u32 %v4490_v38, %v3533_v37  ;;  %v3389_v45 = vld [vmem:[#allocation8 + $0x288] sm:$0xf]  ;;  %v3295_v37 = vld [vmem:[#allocation8 + $0x1d8] sm:$0xf0]  ;;  %v3470_v38 = vor.u32 %v4474_v30, %v3469_v29 }
  0xc4   :  { %v4994_v52 = vpack.c.bf16 %v396_v48, %v396_v48  ;;  %v4418_v42 = vld [vmem:[#allocation8 + $0x174] sm:$0xf0]  ;;  %v3118_v47 = vor.u32 %v4386_v40, %v3117_v39  ;;  %v3390_v56 = vor.u32 %v4454_v46, %v3389_v45  ;;  %v3325_v39 = vld [vmem:[#allocation8 + $0x208] sm:$0xf]  ;;  %v4412_v29 = vld [vmem:[#allocation8 + $0x14c] sm:$0xf] }
  0xc5   :  { %v375_v53 = vpop.f32.mrf.mxu2  ;;  %v4996_v57 = vpack.c.bf16 %v397_v50, %v397_v50  ;;  %v351_v60 = vpop.f32.mrf.mxu0  ;;  %v4486_v50 = vld [vmem:[#allocation8 + $0x394] sm:$0xf0]  ;;  %v3231_v30 = vld [vmem:[#allocation8 + $0x158] sm:$0xf0] }
  0xc6   :  { %v376_v58 = vadd.f32 %v375_v53, %v174_v41  ;;  %v388_v59 = vpop.f32.mrf.mxu3  ;;  %1190 = vmatmul.bf16.vlgmr.msrb.gmra.mxu0 %v4994_v52  ;;  %v364_v0 = vpop.f32.mrf.mxu1  ;;  %v3245_v41 = vld [vmem:[#allocation8 + $0x168] sm:$0xf]  ;;  %v4382_v53 = vld [vmem:[#allocation8 + $0x54] sm:$0xf0] }
  0xc7   :  { %v389_v63 = vadd.f32 %v388_v59, %v175_v49  ;;  %1203 = vmatmul.bf16.vlgmr.msrb.gmra.mxu1 %v4996_v57  ;;  %1286 = vmatpush.bf16.msrb.mxu0 %v3182_v51  ;;  %v3246_v48 = vor.u32 %v4418_v42, %v3245_v41  ;;  %v3517_v49 = vld [vmem:[#allocation8 + $0x388] sm:$0xf]  ;;  %v4450_v60 = vld [vmem:[#allocation8 + $0x274] sm:$0xf0] }
  0xc8   :  { %v394_v3 = vmul.f32 0.01, %v376_v58  ;;  %1299 = vmatpush.bf16.msrb.mxu1 %v3310_v54  ;;  %v3101_v51 = vld [vmem:[#allocation8 + $0x48] sm:$0xf]  ;;  %v4482_v0 = vld [vmem:[#allocation8 + $0x374] sm:$0xf0] }
  0xc9   :  { %v395_v7 = vmul.f32 0.01, %v389_v63  ;;  %v3229_v54 = vld [vmem:[#allocation8 + $0x148] sm:$0xf]  ;;  %v3102_v61 = vor.u32 %v4382_v53, %v3101_v51  ;;  %v4438_v40 = vld [vmem:[#allocation8 + $0x214] sm:$0xf0] }
  0xca   :  { %v398_v11 = vmax.f32 %v376_v58, %v394_v3  ;;  %v3518_v58 = vor.u32 %v4486_v50, %v3517_v49  ;;  %v3373_v59 = vld [vmem:[#allocation8 + $0x268] sm:$0xf]  ;;  %v3230_v62 = vor.u32 %v4414_v55, %v3229_v54  ;;  %v4470_v42 = vld [vmem:[#allocation8 + $0x314] sm:$0xf0]  ;;  %v4392_v49 = vld [vmem:[#allocation8 + $0xac] sm:$0xf]  ;;  %v3326_v50 = vor.u32 %v4438_v40, %v3325_v39 }
  0xcb   :  { %v399_v14 = vmax.f32 %v389_v63, %v395_v7  ;;  %1287 = vmatpush.bf16.msrb.mxu0 %v3166_v4  ;;  %v3501_v63 = vld [vmem:[#allocation8 + $0x368] sm:$0xf]  ;;  %v4410_v4 = vld [vmem:[#allocation8 + $0x134] sm:$0xf0]  ;;  %v3374_v5 = vor.u32 %v4450_v60, %v3373_v59  ;;  %v3151_v51 = vld [vmem:[#allocation8 + $0xb8] sm:$0xf0] }
  0xcc   :  { %v5000_v16 = vpack.c.bf16 %v398_v11, %v398_v11  ;;  %1300 = vmatpush.bf16.msrb.mxu1 %v3294_v8  ;;  %v3213_v3 = vld [vmem:[#allocation8 + $0x128] sm:$0xf]  ;;  %v3502_v6 = vor.u32 %v4482_v0, %v3501_v63  ;;  %v4446_v8 = vld [vmem:[#allocation8 + $0x254] sm:$0xf0]  ;;  %v4424_v53 = vld [vmem:[#allocation8 + $0x1ac] sm:$0xf] }
  0xcd   :  { %v5002_v22 = vpack.c.bf16 %v399_v14, %v399_v14  ;;  %v377_v23 = vpop.f32.mrf.mxu2  ;;  %v3357_v7 = vld [vmem:[#allocation8 + $0x248] sm:$0xf]  ;;  %v3214_v11 = vor.u32 %v4410_v4, %v3213_v3  ;;  %v4374_v14 = vld [vmem:[#allocation8 + $0x14] sm:$0xf0]  ;;  %v3279_v54 = vld [vmem:[#allocation8 + $0x1b8] sm:$0xf0] }
  0xce   :  { %v390_v28 = vpop.f32.mrf.mxu3  ;;  %1216 = vmatmul.bf16.vlgmr.msrb.gmra.mxu2 %v5000_v16  ;;  %v3358_v19 = vor.u32 %v4446_v8, %v3357_v7  ;;  %v3311_v23 = vld [vmem:[#allocation8 + $0x1f8] sm:$0xf0]  ;;  %v3070_v27 = vor.u32 %v4374_v14, %v3069_v13  ;;  %v3453_v41 = vld [vmem:[#allocation8 + $0x308] sm:$0xf]  ;;  %v4460_v59 = vld [vmem:[#allocation8 + $0x2cc] sm:$0xf] }
  0xcf   :  { %1229 = vmatmul.bf16.vlgmr.msrb.gmra.mxu3 %v5002_v22  ;;  %1312 = vmatpush.bf16.msrb.mxu2 %v3438_v15  ;;  %v3197_v15 = vld [vmem:[#allocation8 + $0x108] sm:$0xf]  ;;  %v3454_v55 = vor.u32 %v4470_v42, %v3453_v41  ;;  %v3423_v60 = vld [vmem:[#allocation8 + $0x2d8] sm:$0xf0]  ;;  %v4492_v63 = vld [vmem:[#allocation8 + $0x3cc] sm:$0xf] }
  0xd0   :  { %1325 = vmatpush.bf16.msrb.mxu3 %v3566_v17  ;;  %1288 = vmatpush.bf16.msrb.mxu0 %v3150_v18  ;;  %v4406_v17 = vld [vmem:[#allocation8 + $0x114] sm:$0xf0]  ;;  %v4400_v18 = vld [vmem:[#allocation8 + $0xec] sm:$0xf]  ;;  %v3551_v0 = vld [vmem:[#allocation8 + $0x3d8] sm:$0xf0] }
  0xd1   :  { %1301 = vmatpush.bf16.msrb.mxu1 %v3278_v24  ;;  %v3486_v24 = vor.u32 %v4478_v12, %v3485_v9  ;;  %v3198_v28 = vor.u32 %v4406_v17, %v3197_v15  ;;  %v4420_v3 = vld [vmem:[#allocation8 + $0x18c] sm:$0xf]  ;;  %v3263_v4 = vld [vmem:[#allocation8 + $0x198] sm:$0xf0]  ;;  %v3138_v9 = vor.u32 %v4388_v1, %v3135_v2 }
  0xd2   :  { %v4456_v7 = vld [vmem:[#allocation8 + $0x2ac] sm:$0xf]  ;;  %v3407_v8 = vld [vmem:[#allocation8 + $0x2b8] sm:$0xf0] }
  0xd3   :  { %1313 = vmatpush.bf16.msrb.mxu2 %v3422_v31  ;;  %v3186_v31 = vor.u32 %v4400_v18, %v3183_v20  ;;  %v3535_v12 = vld [vmem:[#allocation8 + $0x3b8] sm:$0xf0]  ;;  %v4384_v13 = vld [vmem:[#allocation8 + $0x6c] sm:$0xf]  ;;  %v3410_v18 = vor.u32 %v4456_v7, %v3407_v8 }
  0xd4   :  { %1326 = vmatpush.bf16.msrb.mxu3 %v3550_v32  ;;  %1289 = vmatpush.bf16.msrb.mxu0 %v3134_v33  ;;  %v3314_v32 = vor.u32 %v4432_v21, %v3311_v23  ;;  %v4396_v33 = vld [vmem:[#allocation8 + $0xcc] sm:$0xf]  ;;  %v3119_v14 = vld [vmem:[#allocation8 + $0x78] sm:$0xf0] }
  0xd5   :  { %1302 = vmatpush.bf16.msrb.mxu1 %v3262_v36  ;;  %v4428_v36 = vld [vmem:[#allocation8 + $0x1cc] sm:$0xf]  ;;  %v3170_v45 = vor.u32 %v4396_v33, %v3167_v35  ;;  %v3247_v17 = vld [vmem:[#allocation8 + $0x178] sm:$0xf0]  ;;  %v3122_v23 = vor.u32 %v4384_v13, %v3119_v14 }
  0xd6   :  { %1242 = vmatmul.bf16.vlgmr.msra.gmra.mxu0 %v4994_v52  ;;  %v3298_v46 = vor.u32 %v4428_v36, %v3295_v37  ;;  %v4416_v15 = vld [vmem:[#allocation8 + $0x16c] sm:$0xf]  ;;  %v3391_v21 = vld [vmem:[#allocation8 + $0x298] sm:$0xf0]  ;;  %v3234_v36 = vor.u32 %v4412_v29, %v3231_v30 }
  0xd7   :  { %1314 = vmatpush.bf16.msrb.mxu2 %v3406_v43  ;;  %1255 = vmatmul.bf16.vlgmr.msra.gmra.mxu1 %v4996_v57  ;;  %v4464_v43 = vld [vmem:[#allocation8 + $0x2ec] sm:$0xf]  ;;  %v3087_v40 = vld [vmem:[#allocation8 + $0x38] sm:$0xf0] }
  0xd8   :  { %1327 = vmatpush.bf16.msrb.mxu3 %v3534_v44  ;;  %1290 = vmatpush.bf16.msrb.mxu0 %v3118_v47  ;;  %v3439_v44 = vld [vmem:[#allocation8 + $0x2f8] sm:$0xf0]  ;;  %v4496_v47 = vld [vmem:[#allocation8 + $0x3ec] sm:$0xf] }
  0xd9   :  { %1303 = vmatpush.bf16.msrb.mxu1 %v3246_v48  ;;  %v3567_v48 = vld [vmem:[#allocation8 + $0x3f8] sm:$0xf0]  ;;  %v4452_v20 = vld [vmem:[#allocation8 + $0x28c] sm:$0xf] }
  0xda   :  { %v4448_v33 = vld [vmem:[#allocation8 + $0x26c] sm:$0xf]  ;;  %v3215_v42 = vld [vmem:[#allocation8 + $0x138] sm:$0xf0] }
  0xdb   :  { %1315 = vmatpush.bf16.msrb.mxu2 %v3390_v56  ;;  %v3442_v56 = vor.u32 %v4464_v43, %v3439_v44  ;;  %v4480_v37 = vld [vmem:[#allocation8 + $0x36c] sm:$0xf]  ;;  %v3327_v14 = vld [vmem:[#allocation8 + $0x218] sm:$0xf0] }
  0xdc   :  { %1328 = vmatpush.bf16.msrb.mxu3 %v3518_v58  ;;  %1291 = vmatpush.bf16.msrb.mxu0 %v3102_v61  ;;  %v3570_v58 = vor.u32 %v4496_v47, %v3567_v48  ;;  %v3154_v61 = vor.u32 %v4392_v49, %v3151_v51  ;;  %v4376_v39 = vld [vmem:[#allocation8 + $0x2c] sm:$0xf] }
  0xdd   :  { %1304 = vmatpush.bf16.msrb.mxu1 %v3230_v62  ;;  %v3282_v62 = vor.u32 %v4424_v53, %v3279_v54  ;;  %v4408_v41 = vld [vmem:[#allocation8 + $0x12c] sm:$0xf]  ;;  %v3090_v48 = vor.u32 %v4376_v39, %v3087_v40  ;;  %v3071_v53 = vld [vmem:[#allocation8 + $0x18] sm:$0xf0]  ;;  %v4545_v39 = vld [vmem:[#allocation11 + $0x16c] sm:$0xf0] }
  0xde   :  { %1268 = vmatmul.bf16.vlgmr.msra.gmra.mxu2 %v5000_v16  ;;  %v4476_v47 = vld [vmem:[#allocation8 + $0x34c] sm:$0xf]  ;;  %v3218_v49 = vor.u32 %v4408_v41, %v3215_v42  ;;  %v3605_v41 = vld [vmem:[#allocation11 + $0x40] sm:$0xf]  ;;  %v4509_v42 = vld [vmem:[#allocation11 + $0x4c] sm:$0xf0] }
  0xdf   :  { %1281 = vmatmul.bf16.vlgmr.msra.gmra.mxu3 %v5002_v22  ;;  %1316 = vmatpush.bf16.msrb.mxu2 %v3374_v5  ;;  %v3426_v5 = vor.u32 %v4460_v59, %v3423_v60  ;;  %v4372_v51 = vld [vmem:[#allocation8 + $0xc] sm:$0xf]  ;;  %v4529_v59 = vld [vmem:[#allocation11 + $0xec] sm:$0xf0]  ;;  %v3813_v60 = vld [vmem:[#allocation11 + $0x1e0] sm:$0xf] }
  0xe0   :  { %1329 = vmatpush.bf16.msrb.mxu3 %v3502_v6  ;;  %1292 = vmatpush.bf16.msrb.mxu0 %v3086_v10  ;;  %v3554_v6 = vor.u32 %v4492_v63, %v3551_v0  ;;  %v3266_v10 = vor.u32 %v4420_v3, %v3263_v4  ;;  %v4404_v54 = vld [vmem:[#allocation8 + $0x10c] sm:$0xf]  ;;  %v3343_v0 = vld [vmem:[#allocation8 + $0x238] sm:$0xf0]  ;;  %v3074_v1 = vor.u32 %v4372_v51, %v3071_v53  ;;  %v4523_v53 = vld [vmem:[#allocation11 + $0xc4] sm:$0xf] }
  0xe1   :  { %1305 = vmatpush.bf16.msrb.mxu1 %v3214_v11  ;;  %v4488_v11 = vld [vmem:[#allocation8 + $0x3ac] sm:$0xf]  ;;  %v3471_v4 = vld [vmem:[#allocation8 + $0x338] sm:$0xf0] }
  0xe2   :  { %v4440_v63 = vld [vmem:[#allocation8 + $0x22c] sm:$0xf] }
  0xe3   :  { %1317 = vmatpush.bf16.msrb.mxu2 %v3358_v19  ;;  %v3538_v19 = vor.u32 %v4488_v11, %v3535_v12  ;;  %v4472_v3 = vld [vmem:[#allocation8 + $0x32c] sm:$0xf]  ;;  %v3346_v8 = vor.u32 %v4440_v63, %v3343_v0  ;;  %v4557_v11 = vld [vmem:[#allocation11 + $0x1cc] sm:$0xf0]  ;;  %v3655_v63 = vld [vmem:[#allocation11 + $0xb0] sm:$0xf0] }
  0xe4   :  { %1330 = vmatpush.bf16.msrb.mxu3 %v3486_v24  ;;  %1293 = vmatpush.bf16.msrb.mxu0 %v3070_v27  ;;  %v3250_v24 = vor.u32 %v4416_v15, %v3247_v17  ;;  %v4380_v27 = vld [vmem:[#allocation8 + $0x4c] sm:$0xf]  ;;  %v3474_v12 = vor.u32 %v4472_v3, %v3471_v4  ;;  %v3455_v17 = vld [vmem:[#allocation8 + $0x318] sm:$0xf0]  ;;  %v4537_v3 = vld [vmem:[#allocation11 + $0x12c] sm:$0xf0] }
  0xe5   :  { %1306 = vmatpush.bf16.msrb.mxu1 %v3198_v28  ;;  %v3103_v28 = vld [vmem:[#allocation8 + $0x58] sm:$0xf0]  ;;  %v4436_v13 = vld [vmem:[#allocation8 + $0x20c] sm:$0xf]  ;;  %v3909_v4 = vld [vmem:[#allocation11 + $0x2a0] sm:$0xf] }
  0xe6   :  { %v3106_v35 = vor.u32 %v4380_v27, %v3103_v28  ;;  %v4468_v15 = vld [vmem:[#allocation8 + $0x30c] sm:$0xf]  ;;  %v3781_v27 = vld [vmem:[#allocation11 + $0x1a0] sm:$0xf]  ;;  %v4553_v28 = vld [vmem:[#allocation11 + $0x1ac] sm:$0xf0] }
  0xe7   :  { %1318 = vmatpush.bf16.msrb.mxu2 %v3342_v34  ;;  %1294 = vmatmul.bf16.vlgmr.msrb.gmra.mxu0 %v4994_v52  ;;  %v3375_v34 = vld [vmem:[#allocation8 + $0x278] sm:$0xf0] }
  0xe8   :  { %1338 = vmatpush.bf16.msra.mxu0 %v3186_v31  ;;  %1331 = vmatpush.bf16.msrb.mxu3 %v3470_v38  ;;  %v3394_v31 = vor.u32 %v4452_v20, %v3391_v21  ;;  %v3503_v38 = vld [vmem:[#allocation8 + $0x378] sm:$0xf0]  ;;  %v3378_v43 = vor.u32 %v4448_v33, %v3375_v34  ;;  %v3782_v33 = vor.u32 %v4553_v28, %v3781_v27  ;;  %v3765_v34 = vld [vmem:[#allocation11 + $0x180] sm:$0xf]  ;;  %v4507_v28 = vld [vmem:[#allocation11 + $0x44] sm:$0xf] }
  0xe9   :  { %1351 = vmatpush.bf16.msra.mxu1 %v3314_v32  ;;  %v3522_v32 = vor.u32 %v4484_v25, %v3519_v26  ;;  %v3506_v44 = vor.u32 %v4480_v37, %v3503_v38  ;;  %v4521_v25 = vld [vmem:[#allocation11 + $0xac] sm:$0xf0]  ;;  %v3458_v26 = vor.u32 %v4468_v15, %v3455_v17  ;;  %v3749_v38 = vld [vmem:[#allocation11 + $0x160] sm:$0xf]  ;;  %v4511_v17 = vld [vmem:[#allocation11 + $0x64] sm:$0xf] }
  0xea   :  { %1307 = vmatmul.bf16.vlgmr.msrb.gmra.mxu1 %v4996_v57  ;;  %v4513_v37 = vld [vmem:[#allocation11 + $0x6c] sm:$0xf0] }
  0xeb   :  { %1319 = vmatpush.bf16.msrb.mxu2 %v3326_v50  ;;  %v3487_v50 = vld [vmem:[#allocation8 + $0x358] sm:$0xf0]  ;;  %v4581_v15 = vld [vmem:[#allocation11 + $0x28c] sm:$0xf0] }
  0xec   :  { %1339 = vmatpush.bf16.msra.mxu0 %v3170_v45  ;;  %1332 = vmatpush.bf16.msrb.mxu3 %v3454_v55  ;;  %v4444_v45 = vld [vmem:[#allocation8 + $0x24c] sm:$0xf]  ;;  %v3199_v55 = vld [vmem:[#allocation8 + $0x118] sm:$0xf0] }
  0xed   :  { %1352 = vmatpush.bf16.msra.mxu1 %v3298_v46  ;;  %v3359_v46 = vld [vmem:[#allocation8 + $0x258] sm:$0xf0]  ;;  %v3202_v2 = vor.u32 %v4404_v54, %v3199_v55  ;;  %v3671_v54 = vld [vmem:[#allocation11 + $0xd0] sm:$0xf0] }
  0xee   :  { %1320 = vmatmul.bf16.vlgmr.msrb.gmra.mxu2 %v5000_v16  ;;  %v3674_v55 = vor.u32 %v4523_v53, %v3671_v54  ;;  %v4625_v53 = vld [vmem:[#allocation11 + $0x3ec] sm:$0xf0]  ;;  %v4543_v54 = vld [vmem:[#allocation11 + $0x164] sm:$0xf] }
  0xef   :  { %1364 = vmatpush.bf16.msra.mxu2 %v3442_v56  ;;  %1333 = vmatmul.bf16.vlgmr.msrb.gmra.mxu3 %v5002_v22  ;;  %v3685_v56 = vld [vmem:[#allocation11 + $0xe0] sm:$0xf] }
  0xf0   :  { %1377 = vmatpush.bf16.msra.mxu3 %v3570_v58  ;;  %1340 = vmatpush.bf16.msra.mxu0 %v3154_v61  ;;  %v3362_v58 = vor.u32 %v4444_v45, %v3359_v46  ;;  %v4561_v61 = vld [vmem:[#allocation11 + $0x1ec] sm:$0xf0]  ;;  %v3589_v45 = vld [vmem:[#allocation11 + $0x20] sm:$0xf] }
  0xf1   :  { %1353 = vmatpush.bf16.msra.mxu1 %v3282_v62  ;;  %v3490_v62 = vor.u32 %v4476_v47, %v3487_v50  ;;  %v3814_v7 = vor.u32 %v4561_v61, %v3813_v60  ;;  %v4501_v47 = vld [vmem:[#allocation11 + $0xc] sm:$0xf0] }
  0xf2   :  { %v4589_v61 = vld [vmem:[#allocation11 + $0x2cc] sm:$0xf0] }
  0xf3   :  { %1365 = vmatpush.bf16.msra.mxu2 %v3426_v5  ;;  %v3686_v5 = vor.u32 %v4529_v59, %v3685_v56  ;;  %v3733_v56 = vld [vmem:[#allocation11 + $0x140] sm:$0xf] }
  0xf4   :  { %1378 = vmatpush.bf16.msra.mxu3 %v3554_v6  ;;  %1341 = vmatpush.bf16.msra.mxu0 %v3138_v9  ;;  %v3669_v6 = vld [vmem:[#allocation11 + $0xc0] sm:$0xf]  ;;  %v4525_v9 = vld [vmem:[#allocation11 + $0xcc] sm:$0xf0] }
  0xf5   :  { %1354 = vmatpush.bf16.msra.mxu1 %v3266_v10  ;;  %v3797_v10 = vld [vmem:[#allocation11 + $0x1c0] sm:$0xf]  ;;  %v3670_v20 = vor.u32 %v4525_v9, %v3669_v6  ;;  %v4585_v6 = vld [vmem:[#allocation11 + $0x2ac] sm:$0xf0] }
  0xf6   :  { %v3798_v21 = vor.u32 %v4557_v11, %v3797_v10  ;;  %v3925_v59 = vld [vmem:[#allocation11 + $0x2c0] sm:$0xf]  ;;  %v3910_v9 = vor.u32 %v4585_v6, %v3909_v4 }
  0xf7   :  { %1366 = vmatpush.bf16.msra.mxu2 %v3410_v18  ;;  %v3941_v18 = vld [vmem:[#allocation11 + $0x2e0] sm:$0xf]  ;;  %v3926_v0 = vor.u32 %v4589_v61, %v3925_v59  ;;  %v4591_v59 = vld [vmem:[#allocation11 + $0x2e4] sm:$0xf] }
  0xf8   :  { %1379 = vmatpush.bf16.msra.mxu3 %v3538_v19  ;;  %1342 = vmatpush.bf16.msra.mxu0 %v3122_v23  ;;  %v4593_v19 = vld [vmem:[#allocation11 + $0x2ec] sm:$0xf0]  ;;  %v3330_v23 = vor.u32 %v4436_v13, %v3327_v14  ;;  %v3701_v11 = vld [vmem:[#allocation11 + $0x100] sm:$0xf] }
  0xf9   :  { %1355 = vmatpush.bf16.msra.mxu1 %v3250_v24  ;;  %v3653_v24 = vld [vmem:[#allocation11 + $0xa0] sm:$0xf]  ;;  %v3942_v29 = vor.u32 %v4593_v19, %v3941_v18  ;;  %v3623_v18 = vld [vmem:[#allocation11 + $0x70] sm:$0xf0] }
  0xfa   :  { %v3654_v30 = vor.u32 %v4521_v25, %v3653_v24  ;;  %v3893_v13 = vld [vmem:[#allocation11 + $0x280] sm:$0xf] }
  0xfb   :  { %1367 = vmatpush.bf16.msra.mxu2 %v3394_v31  ;;  %v3637_v31 = vld [vmem:[#allocation11 + $0x80] sm:$0xf]  ;;  %v3894_v19 = vor.u32 %v4581_v15, %v3893_v13  ;;  %v4535_v13 = vld [vmem:[#allocation11 + $0x124] sm:$0xf] }
  0xfc   :  { %1380 = vmatpush.bf16.msra.mxu3 %v3522_v32  ;;  %1343 = vmatpush.bf16.msra.mxu0 %v3106_v35  ;;  %v4517_v32 = vld [vmem:[#allocation11 + $0x8c] sm:$0xf0]  ;;  %v3877_v25 = vld [vmem:[#allocation11 + $0x260] sm:$0xf] }
  0xfd   :  { %1356 = vmatpush.bf16.msra.mxu1 %v3234_v36  ;;  %v4549_v35 = vld [vmem:[#allocation11 + $0x18c] sm:$0xf0]  ;;  %v3621_v36 = vld [vmem:[#allocation11 + $0x60] sm:$0xf] }
  0xfe   :  { %v3622_v40 = vor.u32 %v4513_v37, %v3621_v36  ;;  %v4503_v36 = vld [vmem:[#allocation11 + $0x24] sm:$0xf]  ;;  %v3591_v37 = vld [vmem:[#allocation11 + $0x30] sm:$0xf0] }
  0xff   :  { %1368 = vmatpush.bf16.msra.mxu2 %v3378_v43  ;;  %v3750_v43 = vor.u32 %v4545_v39, %v3749_v38  ;;  %v4551_v38 = vld [vmem:[#allocation11 + $0x1a4] sm:$0xf]  ;;  %v3783_v39 = vld [vmem:[#allocation11 + $0x1b0] sm:$0xf0] }
 0x100   :  { %1381 = vmatpush.bf16.msra.mxu3 %v3506_v44  ;;  %1344 = vmatpush.bf16.msra.mxu0 %v3090_v48  ;;  %v3606_v44 = vor.u32 %v4509_v42, %v3605_v41  ;;  %v4527_v48 = vld [vmem:[#allocation11 + $0xe4] sm:$0xf]  ;;  %v3845_v41 = vld [vmem:[#allocation11 + $0x220] sm:$0xf]  ;;  %v4569_v42 = vld [vmem:[#allocation11 + $0x22c] sm:$0xf0] }
 0x101   :  { %1357 = vmatpush.bf16.msra.mxu1 %v3218_v49  ;;  %v3687_v49 = vld [vmem:[#allocation11 + $0xf0] sm:$0xf0] }
 0x102   :  { %v3690_v51 = vor.u32 %v4527_v48, %v3687_v49  ;;  %v3829_v48 = vld [vmem:[#allocation11 + $0x200] sm:$0xf]  ;;  %v4565_v49 = vld [vmem:[#allocation11 + $0x20c] sm:$0xf0] }
 0x103   :  { %1369 = vmatpush.bf16.msra.mxu2 %v3362_v58  ;;  %v4541_v58 = vld [vmem:[#allocation11 + $0x14c] sm:$0xf0] }
 0x104   :  { %1382 = vmatpush.bf16.msra.mxu3 %v3490_v62  ;;  %1345 = vmatpush.bf16.msra.mxu0 %v3074_v1  ;;  %v3734_v60 = vor.u32 %v4541_v58, %v3733_v56  ;;  %v4519_v62 = vld [vmem:[#allocation11 + $0xa4] sm:$0xf] }
 0x105   :  { %1358 = vmatpush.bf16.msra.mxu1 %v3202_v2  ;;  %v3658_v1 = vor.u32 %v4519_v62, %v3655_v63  ;;  %v3717_v2 = vld [vmem:[#allocation11 + $0x120] sm:$0xf]  ;;  %v4621_v63 = vld [vmem:[#allocation11 + $0x3cc] sm:$0xf0] }
 0x106   :  { %v4053_v62 = vld [vmem:[#allocation11 + $0x3c0] sm:$0xf] }
 0x107   :  { %1370 = vmatpush.bf16.msra.mxu2 %v3346_v8  ;;  %1346 = vmatmul.bf16.vlgmr.msra.gmra.mxu0 %v4994_v52  ;;  %v3638_v52 = vor.u32 %v4517_v32, %v3637_v31  ;;  %v3639_v8 = vld [vmem:[#allocation11 + $0x90] sm:$0xf0] }
 0x108   :  { %2180 = vmatpush.bf16.msrb.mxu0 %v3686_v5  ;;  %1383 = vmatpush.bf16.msra.mxu3 %v3474_v12  ;;  %v3718_v5 = vor.u32 %v4537_v3, %v3717_v2  ;;  %v4533_v12 = vld [vmem:[#allocation11 + $0x10c] sm:$0xf0]  ;;  %v3799_v32 = vld [vmem:[#allocation11 + $0x1d0] sm:$0xf0]  ;;  %v4587_v3 = vld [vmem:[#allocation11 + $0x2c4] sm:$0xf] }
 0x109   :  { %2193 = vmatpush.bf16.msrb.mxu1 %v3814_v7  ;;  %v4515_v7 = vld [vmem:[#allocation11 + $0x84] sm:$0xf]  ;;  %v3702_v14 = vor.u32 %v4533_v12, %v3701_v11  ;;  %v3735_v2 = vld [vmem:[#allocation11 + $0x150] sm:$0xf0]  ;;  %v4617_v11 = vld [vmem:[#allocation11 + $0x3ac] sm:$0xf0] }
 0x10a   :  { %1359 = vmatmul.bf16.vlgmr.msra.gmra.mxu1 %v4996_v57  ;;  %v3766_v57 = vor.u32 %v4549_v35, %v3765_v34  ;;  %v3642_v10 = vor.u32 %v4515_v7, %v3639_v8  ;;  %v3861_v34 = vld [vmem:[#allocation11 + $0x240] sm:$0xf]  ;;  %v4573_v35 = vld [vmem:[#allocation11 + $0x24c] sm:$0xf0]  ;;  %v5018_v8 = vld [vmem:[#allocation10] sm:$0xf] }
 0x10b   :  { %1371 = vmatpush.bf16.msra.mxu2 %v3330_v23  ;;  %v3815_v23 = vld [vmem:[#allocation11 + $0x1f0] sm:$0xf0] }
 0x10c   :  { %2181 = vmatpush.bf16.msrb.mxu0 %v3670_v20  ;;  %1384 = vmatpush.bf16.msra.mxu3 %v3458_v26  ;;  %v3626_v20 = vor.u32 %v4511_v17, %v3623_v18  ;;  %v4577_v26 = vld [vmem:[#allocation11 + $0x26c] sm:$0xf0]  ;;  %v4583_v17 = vld [vmem:[#allocation11 + $0x2a4] sm:$0xf]  ;;  %v3911_v18 = vld [vmem:[#allocation11 + $0x2b0] sm:$0xf0] }
 0x10d   :  { %2194 = vmatpush.bf16.msrb.mxu1 %v3798_v21  ;;  %v4559_v21 = vld [vmem:[#allocation11 + $0x1e4] sm:$0xf]  ;;  %v3878_v27 = vor.u32 %v4577_v26, %v3877_v25  ;;  %v3703_v26 = vld [vmem:[#allocation11 + $0x110] sm:$0xf0] }
 0x10e   :  { %1372 = vmatmul.bf16.vlgmr.msra.gmra.mxu2 %v5000_v16  ;;  %v4505_v16 = vld [vmem:[#allocation11 + $0x2c] sm:$0xf0]  ;;  %v3818_v24 = vor.u32 %v4559_v21, %v3815_v23  ;;  %v4021_v21 = vld [vmem:[#allocation11 + $0x380] sm:$0xf]  ;;  %v4531_v25 = vld [vmem:[#allocation11 + $0x104] sm:$0xf] }
 0x10f   :  { %2206 = vmatpush.bf16.msrb.mxu2 %v3942_v29  ;;  %1385 = vmatmul.bf16.vlgmr.msra.gmra.mxu3 %v5002_v22  ;;  %v3590_v46 = vor.u32 %v4505_v16, %v3589_v45  ;;  %v3573_v22 = vld [vmem:[#allocation11] sm:$0xf]  ;;  %v3607_v29 = vld [vmem:[#allocation11 + $0x50] sm:$0xf0]  ;;  %v4547_v16 = vld [vmem:[#allocation11 + $0x184] sm:$0xf] }
 0x110   :  { %2182 = vmatpush.bf16.msrb.mxu0 %v3654_v30  ;;  %v3574_v50 = vor.u32 %v4501_v47, %v3573_v22  ;;  %v4555_v30 = vld [vmem:[#allocation11 + $0x1c4] sm:$0xf]  ;;  %v3610_v31 = vor.u32 %v4507_v28, %v3607_v29  ;;  %v3575_v45 = vld [vmem:[#allocation11 + $0x10] sm:$0xf0]  ;;  %v4613_v23 = vld [vmem:[#allocation11 + $0x38c] sm:$0xf0]  ;;  %v3706_v28 = vor.u32 %v4531_v25, %v3703_v26 }
 0x111   :  { %2195 = vmatpush.bf16.msrb.mxu1 %v3782_v33  ;;  %v3802_v33 = vor.u32 %v4555_v30, %v3799_v32  ;;  %v3767_v22 = vld [vmem:[#allocation11 + $0x190] sm:$0xf0] }
 0x112   :  { %v3770_v47 = vor.u32 %v4547_v16, %v3767_v22  ;;  %v3895_v29 = vld [vmem:[#allocation11 + $0x290] sm:$0xf0] }
 0x113   :  { %2207 = vmatpush.bf16.msrb.mxu2 %v3926_v0  ;;  %v4054_v0 = vor.u32 %v4621_v63, %v4053_v62  ;;  %v3863_v16 = vld [vmem:[#allocation11 + $0x250] sm:$0xf0]  ;;  %v3677_v62 = vld [vmem:[#allocation11 + $0xc8] sm:$0xf] }
 0x114   :  { %2183 = vmatpush.bf16.msrb.mxu0 %v3638_v52  ;;  %v3862_v52 = vor.u32 %v4573_v35, %v3861_v34  ;;  %v4005_v34 = vld [vmem:[#allocation11 + $0x360] sm:$0xf]  ;;  %v4609_v35 = vld [vmem:[#allocation11 + $0x36c] sm:$0xf0] }
 0x115   :  { %2196 = vmatpush.bf16.msrb.mxu1 %v3766_v57  ;;  %v3594_v57 = vor.u32 %v4503_v36, %v3591_v37  ;;  %v4575_v36 = vld [vmem:[#allocation11 + $0x264] sm:$0xf]  ;;  %v3879_v37 = vld [vmem:[#allocation11 + $0x270] sm:$0xf0] }
 0x117   :  { %2208 = vmatpush.bf16.msrb.mxu2 %v3910_v9 }
 0x118   :  { %2184 = vmatpush.bf16.msrb.mxu0 %v3622_v40  ;;  %v3786_v40 = vor.u32 %v4551_v38, %v3783_v39 }
 0x119   :  { %2197 = vmatpush.bf16.msrb.mxu1 %v3750_v43  ;;  %v3846_v43 = vor.u32 %v4569_v42, %v3845_v41  ;;  %v4605_v41 = vld [vmem:[#allocation11 + $0x34c] sm:$0xf0] }
 0x11b   :  { %2209 = vmatpush.bf16.msrb.mxu2 %v3894_v19  ;;  %v534_v19 = vperm.slane %v5018_v8, 0 }
 0x11c   :  { %2185 = vmatpush.bf16.msrb.mxu0 %v3606_v44  ;;  %v4499_v44 = vld [vmem:[#allocation11 + $0x4] sm:$0xf] }
 0x11d   :  { %2198 = vmatpush.bf16.msrb.mxu1 %v3734_v60  ;;  %v3943_v60 = vld [vmem:[#allocation11 + $0x2f0] sm:$0xf0] }
 0x11e   :  { %v3946_v61 = vor.u32 %v4591_v59, %v3943_v60 }
 0x11f   :  { %2210 = vmatpush.bf16.msrb.mxu2 %v3878_v27  ;;  %v4579_v27 = vld [vmem:[#allocation11 + $0x284] sm:$0xf] }
 0x120   :  { %2186 = vmatpush.bf16.msrb.mxu0 %v3590_v46  ;;  %v3578_v46 = vor.u32 %v4499_v44, %v3575_v45  ;;  %v3898_v32 = vor.u32 %v4579_v27, %v3895_v29  ;;  %v4571_v45 = vld [vmem:[#allocation11 + $0x244] sm:$0xf] }
 0x121   :  { %2199 = vmatpush.bf16.msrb.mxu1 %v3718_v5  ;;  %v3927_v5 = vld [vmem:[#allocation11 + $0x2d0] sm:$0xf0] }
 0x122   :  { %v3930_v7 = vor.u32 %v4587_v3, %v3927_v5  ;;  %v4597_v3 = vld [vmem:[#allocation11 + $0x30c] sm:$0xf0] }
 0x123   :  { %2211 = vmatpush.bf16.msrb.mxu2 %v3862_v52  ;;  %v4006_v52 = vor.u32 %v4609_v35, %v4005_v34 }
 0x124   :  { %2187 = vmatpush.bf16.msrb.mxu0 %v3574_v50  ;;  %v4069_v50 = vld [vmem:[#allocation11 + $0x3e0] sm:$0xf] }
 0x125   :  { %2200 = vmatpush.bf16.msrb.mxu1 %v3702_v14  ;;  %v4070_v56 = vor.u32 %v4625_v53, %v4069_v50  ;;  %v3719_v14 = vld [vmem:[#allocation11 + $0x130] sm:$0xf0]  ;;  %v4530_v50 = vld [vmem:[#allocation11 + $0xf4] sm:$0xf0]  ;;  %v4601_v53 = vld [vmem:[#allocation11 + $0x32c] sm:$0xf0] }
 0x126   :  { %v3722_v15 = vor.u32 %v4535_v13, %v3719_v14 }
 0x127   :  { %2212 = vmatpush.bf16.msrb.mxu2 %v3846_v43  ;;  %2219 = vmatpush.bf16.msrb.mxu3 %v4070_v56  ;;  %v4567_v56 = vld [vmem:[#allocation11 + $0x224] sm:$0xf] }
 0x128   :  { %2232 = vmatpush.bf16.msra.mxu0 %v3690_v51  ;;  %v3830_v51 = vor.u32 %v4565_v49, %v3829_v48  ;;  %v3693_v48 = vld [vmem:[#allocation11 + $0xe8] sm:$0xf] }
 0x129   :  { %2245 = vmatpush.bf16.msra.mxu1 %v3818_v24  ;;  %v4022_v24 = vor.u32 %v4613_v23, %v4021_v21  ;;  %v4619_v21 = vld [vmem:[#allocation11 + $0x3c4] sm:$0xf]  ;;  %v4055_v23 = vld [vmem:[#allocation11 + $0x3d0] sm:$0xf0] }
 0x12b   :  { %2213 = vmatpush.bf16.msrb.mxu2 %v3830_v51  ;;  %2220 = vmatpush.bf16.msrb.mxu3 %v4054_v0  ;;  %v3973_v51 = vld [vmem:[#allocation11 + $0x320] sm:$0xf]  ;;  %v3694_v0 = vor.u32 %v4530_v50, %v3693_v48  ;;  %v3613_v48 = vld [vmem:[#allocation11 + $0x48] sm:$0xf] }
 0x12c   :  { %2233 = vmatpush.bf16.msra.mxu0 %v3674_v55  ;;  %v3751_v55 = vld [vmem:[#allocation11 + $0x170] sm:$0xf0]  ;;  %v3805_v50 = vld [vmem:[#allocation11 + $0x1c8] sm:$0xf] }
 0x12d   :  { %2246 = vmatpush.bf16.msra.mxu1 %v3802_v33  ;;  %v3754_v58 = vor.u32 %v4543_v54, %v3751_v55  ;;  %v3974_v55 = vor.u32 %v4601_v53, %v3973_v51 }
 0x12f   :  { %2258 = vmatpush.bf16.msra.mxu2 %v3946_v61  ;;  %v535_v61 = vperm.slane %v5018_v8, 1 }
 0x130   :  { %2234 = vmatpush.bf16.msra.mxu0 %v3658_v1  ;;  %v4539_v1 = vld [vmem:[#allocation11 + $0x144] sm:$0xf] }
 0x131   :  { %2247 = vmatpush.bf16.msra.mxu1 %v3786_v40  ;;  %v3738_v4 = vor.u32 %v4539_v1, %v3735_v2  ;;  %v3989_v40 = vld [vmem:[#allocation11 + $0x340] sm:$0xf]  ;;  %v4526_v1 = vld [vmem:[#allocation11 + $0xd4] sm:$0xf0] }
 0x132   :  { %v3990_v44 = vor.u32 %v4605_v41, %v3989_v40  ;;  %v3957_v2 = vld [vmem:[#allocation11 + $0x300] sm:$0xf] }
 0x133   :  { %2259 = vmatpush.bf16.msra.mxu2 %v3930_v7  ;;  %v4563_v7 = vld [vmem:[#allocation11 + $0x204] sm:$0xf] }
 0x134   :  { %2235 = vmatpush.bf16.msra.mxu0 %v3642_v10  ;;  %v4037_v10 = vld [vmem:[#allocation11 + $0x3a0] sm:$0xf] }
 0x135   :  { %2248 = vmatpush.bf16.msra.mxu1 %v3770_v47  ;;  %v4038_v12 = vor.u32 %v4617_v11, %v4037_v10  ;;  %v4623_v10 = vld [vmem:[#allocation11 + $0x3e4] sm:$0xf] }
 0x137   :  { %2221 = vmatpush.bf16.msrb.mxu3 %v4038_v12  ;;  %v4071_v12 = vld [vmem:[#allocation11 + $0x3f0] sm:$0xf0] }
 0x138   :  { %2236 = vmatpush.bf16.msra.mxu0 %v3626_v20  ;;  %v3914_v20 = vor.u32 %v4583_v17, %v3911_v18  ;;  %v3678_v18 = vor.u32 %v4526_v1, %v3677_v62  ;;  %v3789_v1 = vld [vmem:[#allocation11 + $0x1a8] sm:$0xf] }
 0x139   :  { %2249 = vmatpush.bf16.msra.mxu1 %v3754_v58  ;;  %v3847_v58 = vld [vmem:[#allocation11 + $0x230] sm:$0xf0] }
 0x13a   :  { %2260 = vmatpush.bf16.msra.mxu2 %v3914_v20  ;;  %v3850_v59 = vor.u32 %v4567_v56, %v3847_v58  ;;  %v4522_v20 = vld [vmem:[#allocation11 + $0xb4] sm:$0xf0]  ;;  %v4007_v56 = vld [vmem:[#allocation11 + $0x370] sm:$0xf0] }
 0x13b   :  { %2222 = vmatpush.bf16.msrb.mxu3 %v4022_v24  ;;  %v4058_v24 = vor.u32 %v4619_v21, %v4055_v23  ;;  %v4528_v23 = vld [vmem:[#allocation11 + $0xec] sm:$0xf] }
 0x13c   :  { %2237 = vmatpush.bf16.msra.mxu0 %v3610_v31 }
 0x13d   :  { %2250 = vmatpush.bf16.msra.mxu1 %v3738_v4 }
 0x13e   :  { %2261 = vmatpush.bf16.msra.mxu2 %v3898_v32  ;;  %v4615_v32 = vld [vmem:[#allocation11 + $0x3a4] sm:$0xf] }
 0x13f   :  { %2223 = vmatpush.bf16.msrb.mxu3 %v4006_v52  ;;  %v3629_v52 = vld [vmem:[#allocation11 + $0x68] sm:$0xf] }
 0x140   :  { %2238 = vmatpush.bf16.msra.mxu0 %v3594_v57  ;;  %v3882_v57 = vor.u32 %v4575_v36, %v3879_v37 }
 0x141   :  { %2251 = vmatpush.bf16.msra.mxu1 %v3722_v15  ;;  %v4074_v15 = vor.u32 %v4623_v10, %v4071_v12  ;;  %v3581_v12 = vld [vmem:[#allocation11 + $0x8] sm:$0xf] }
 0x142   :  { %2262 = vmatpush.bf16.msra.mxu2 %v3882_v57  ;;  %v4514_v57 = vld [vmem:[#allocation11 + $0x74] sm:$0xf0] }
 0x143   :  { %v1191_v6 = vpop.f32.mrf.mxu0  ;;  %2224 = vmatpush.bf16.msrb.mxu3 %v3990_v44 }
 0x144   :  { %2239 = vmatpush.bf16.msra.mxu0 %v3578_v46  ;;  %v1204_v9 = vpop.f32.mrf.mxu1  ;;  %v1192_v30 = vadd.f32 %v1191_v6, %v534_v19  ;;  %v3866_v46 = vor.u32 %v4571_v45, %v3863_v16  ;;  %v3958_v6 = vor.u32 %v4597_v3, %v3957_v2  ;;  %v3661_v19 = vld [vmem:[#allocation11 + $0xa8] sm:$0xf]  ;;  %v536_v16 = vperm.slane %v5018_v8, 2  ;;  %v4554_v3 = vld [vmem:[#allocation11 + $0x1b4] sm:$0xf0] }
 0x145   :  { %2252 = vmatpush.bf16.msra.mxu1 %v3706_v28  ;;  %v3662_v27 = vor.u32 %v4522_v20, %v3661_v19  ;;  %v3645_v28 = vld [vmem:[#allocation11 + $0x88] sm:$0xf]  ;;  %v4599_v19 = vld [vmem:[#allocation11 + $0x324] sm:$0xf]  ;;  %v3975_v20 = vld [vmem:[#allocation11 + $0x330] sm:$0xf0] }
 0x146   :  { %v1205_v38 = vadd.f32 %v1204_v9, %v1192_v30  ;;  %2263 = vmatpush.bf16.msra.mxu2 %v3866_v46  ;;  %v3831_v9 = vld [vmem:[#allocation11 + $0x210] sm:$0xf0] }
 0x147   :  { %2225 = vmatpush.bf16.msrb.mxu3 %v3974_v55  ;;  %v3834_v11 = vor.u32 %v4563_v7, %v3831_v9  ;;  %v4607_v55 = vld [vmem:[#allocation11 + $0x364] sm:$0xf] }
 0x148   :  { %v4010_v58 = vor.u32 %v4607_v55, %v4007_v56  ;;  %v4538_v55 = vld [vmem:[#allocation11 + $0x134] sm:$0xf0]  ;;  %v3917_v56 = vld [vmem:[#allocation11 + $0x2a8] sm:$0xf] }
 0x14a   :  { %2264 = vmatpush.bf16.msra.mxu2 %v3850_v59 }
 0x14b   :  { %v1193_v31 = vpop.f32.mrf.mxu0  ;;  %2226 = vmatpush.bf16.msrb.mxu3 %v3958_v6  ;;  %v3991_v6 = vld [vmem:[#allocation11 + $0x350] sm:$0xf0] }
 0x14c   :  { %v1206_v33 = vpop.f32.mrf.mxu1  ;;  %v4518_v31 = vld [vmem:[#allocation11 + $0x94] sm:$0xf0] }
 0x14d   :  { %v4039_v33 = vld [vmem:[#allocation11 + $0x3b0] sm:$0xf0]  ;;  %v3646_v37 = vor.u32 %v4518_v31, %v3645_v28  ;;  %v3949_v31 = vld [vmem:[#allocation11 + $0x2e8] sm:$0xf] }
 0x14e   :  { %2265 = vmatpush.bf16.msra.mxu2 %v3834_v11  ;;  %v4042_v34 = vor.u32 %v4615_v32, %v4039_v33  ;;  %v3790_v11 = vor.u32 %v4554_v3, %v3789_v1  ;;  %v4594_v33 = vld [vmem:[#allocation11 + $0x2f4] sm:$0xf0]  ;;  %v3709_v1 = vld [vmem:[#allocation11 + $0x108] sm:$0xf] }
 0x14f   :  { %2271 = vmatpush.bf16.msra.mxu3 %v4074_v15  ;;  %v3901_v3 = vld [vmem:[#allocation11 + $0x288] sm:$0xf] }
 0x151   :  { %v1217_v39 = vpop.f32.mrf.mxu2 }
 0x152   :  { %v1218_v42 = vadd.f32 %v1217_v39, %v1205_v38  ;;  %v1230_v43 = vpop.f32.mrf.mxu3  ;;  %v3821_v38 = vld [vmem:[#allocation11 + $0x1e8] sm:$0xf]  ;;  %v4562_v39 = vld [vmem:[#allocation11 + $0x1f4] sm:$0xf0] }
 0x153   :  { %v1243_v47 = vpop.f32.mrf.mxu0  ;;  %2272 = vmatpush.bf16.msra.mxu3 %v4058_v24  ;;  %v3695_v24 = vld [vmem:[#allocation11 + $0xf8] sm:$0xf0] }
 0x154   :  { %v1231_v22 = vadd.f32 %v1230_v43, %v1218_v42  ;;  %v1256_v49 = vpop.f32.mrf.mxu1  ;;  %v1244_v13 = vadd.f32 %v1243_v47, %v535_v61  ;;  %v4611_v42 = vld [vmem:[#allocation11 + $0x384] sm:$0xf]  ;;  %v4023_v43 = vld [vmem:[#allocation11 + $0x390] sm:$0xf0]  ;;  %v3822_v47 = vor.u32 %v4562_v39, %v3821_v38  ;;  %v3698_v32 = vor.u32 %v4528_v23, %v3695_v24  ;;  %v4556_v23 = vld [vmem:[#allocation11 + $0x1cc] sm:$0xf] }
 0x155   :  { %v4026_v44 = vor.u32 %v4611_v42, %v4023_v43  ;;  %v3950_v42 = vor.u32 %v4594_v33, %v3949_v31  ;;  %v3807_v24 = vld [vmem:[#allocation11 + $0x1d8] sm:$0xf0]  ;;  %v4574_v31 = vld [vmem:[#allocation11 + $0x254] sm:$0xf0] }
 0x156   :  { %v1390_v54 = vmul.f32 0.01, %v1231_v22  ;;  %v1257_v25 = vadd.f32 %v1256_v49, %v1244_v13  ;;  %v4510_v49 = vld [vmem:[#allocation11 + $0x54] sm:$0xf0]  ;;  %v3599_v33 = vld [vmem:[#allocation11 + $0x38] sm:$0xf0] }
 0x157   :  { %2273 = vmatpush.bf16.msra.mxu3 %v4042_v34  ;;  %v3614_v61 = vor.u32 %v4510_v49, %v3613_v48  ;;  %v4502_v13 = vld [vmem:[#allocation11 + $0x14] sm:$0xf0]  ;;  %v4595_v34 = vld [vmem:[#allocation11 + $0x304] sm:$0xf]  ;;  %v3663_v48 = vld [vmem:[#allocation11 + $0xb8] sm:$0xf0] }
 0x158   :  { %v1394_v60 = vmax.f32 %v1231_v22, %v1390_v54  ;;  %v3630_v22 = vor.u32 %v4514_v57, %v3629_v52  ;;  %v4558_v54 = vld [vmem:[#allocation11 + $0x1d4] sm:$0xf0] }
 0x159   :  { %v1219_v63 = vpop.f32.mrf.mxu2  ;;  %v3806_v62 = vor.u32 %v4558_v54, %v3805_v50  ;;  %v3725_v54 = vld [vmem:[#allocation11 + $0x128] sm:$0xf] }
 0x15a   :  { %v5022_v4 = vpack.c.bf16 %v1394_v60, %v1394_v60  ;;  %v1232_v5 = vpop.f32.mrf.mxu3  ;;  %v3597_v63 = vld [vmem:[#allocation11 + $0x28] sm:$0xf] }
 0x15b   :  { %v1245_v14 = vpop.f32.mrf.mxu0  ;;  %2274 = vmatpush.bf16.msra.mxu3 %v4026_v44  ;;  %v4603_v5 = vld [vmem:[#allocation11 + $0x344] sm:$0xf]  ;;  %v3741_v44 = vld [vmem:[#allocation11 + $0x148] sm:$0xf] }
 0x15c   :  { %2188 = vmatmul.bf16.vlgmr.msrb.gmra.mxu0 %v5022_v4  ;;  %v1258_v17 = vpop.f32.mrf.mxu1  ;;  %v3994_v7 = vor.u32 %v4603_v5, %v3991_v6  ;;  %v3773_v14 = vld [vmem:[#allocation11 + $0x188] sm:$0xf]  ;;  %v4582_v6 = vld [vmem:[#allocation11 + $0x294] sm:$0xf0] }
 0x15d   :  { %2284 = vmatpush.bf16.msrb.mxu0 %v3694_v0  ;;  %v4506_v0 = vld [vmem:[#allocation11 + $0x34] sm:$0xf0] }
 0x15e   :  { %v3598_v10 = vor.u32 %v4506_v0, %v3597_v63 }
 0x15f   :  { %2275 = vmatpush.bf16.msra.mxu3 %v4010_v58  ;;  %v4586_v58 = vld [vmem:[#allocation11 + $0x2b4] sm:$0xf0] }
 0x160   :  { %v3918_v63 = vor.u32 %v4586_v58, %v3917_v56  ;;  %v4626_v56 = vld [vmem:[#allocation11 + $0x3f4] sm:$0xf0]  ;;  %v4544_v58 = vld [vmem:[#allocation11 + $0x16c] sm:$0xf] }
 0x161   :  { %2285 = vmatpush.bf16.msrb.mxu0 %v3678_v18  ;;  %v1269_v26 = vpop.f32.mrf.mxu2  ;;  %v4550_v18 = vld [vmem:[#allocation11 + $0x194] sm:$0xf0] }
 0x162   :  { %v1270_v29 = vadd.f32 %v1269_v26, %v1257_v25  ;;  %v1282_v30 = vpop.f32.mrf.mxu3  ;;  %v3978_v25 = vor.u32 %v4599_v19, %v3975_v20  ;;  %v3774_v28 = vor.u32 %v4550_v18, %v3773_v14  ;;  %v3902_v14 = vor.u32 %v4582_v6, %v3901_v3  ;;  %v4578_v19 = vld [vmem:[#allocation11 + $0x274] sm:$0xf0]  ;;  %v4508_v20 = vld [vmem:[#allocation11 + $0x4c] sm:$0xf] }
 0x163   :  { %2276 = vmatpush.bf16.msra.mxu3 %v3994_v7  ;;  %v4512_v7 = vld [vmem:[#allocation11 + $0x6c] sm:$0xf] }
 0x164   :  { %v1283_v35 = vadd.f32 %v1282_v30, %v1270_v29  ;;  %v1295_v36 = vpop.f32.mrf.mxu0  ;;  %v3757_v29 = vld [vmem:[#allocation11 + $0x168] sm:$0xf]  ;;  %v4546_v30 = vld [vmem:[#allocation11 + $0x174] sm:$0xf0] }
 0x165   :  { %2286 = vmatpush.bf16.msrb.mxu0 %v3662_v27  ;;  %v1296_v59 = vadd.f32 %v1295_v36, %v536_v16  ;;  %v3582_v27 = vor.u32 %v4502_v13, %v3581_v12  ;;  %v4524_v36 = vld [vmem:[#allocation11 + $0xcc] sm:$0xf]  ;;  %v3758_v39 = vor.u32 %v4546_v30, %v3757_v29  ;;  %v3933_v16 = vld [vmem:[#allocation11 + $0x2c8] sm:$0xf]  ;;  %v537_v12 = vperm.slane %v5018_v8, 3 }
 0x166   :  { %v1391_v40 = vmul.f32 0.01, %v1283_v35  ;;  %v3810_v30 = vor.u32 %v4556_v23, %v3807_v24  ;;  %v4584_v23 = vld [vmem:[#allocation11 + $0x2ac] sm:$0xf]  ;;  %v3919_v24 = vld [vmem:[#allocation11 + $0x2b8] sm:$0xf0] }
 0x167   :  { %v1308_v41 = vpop.f32.mrf.mxu1  ;;  %2277 = vmatpush.bf16.msra.mxu3 %v3978_v25 }
 0x168   :  { %v1395_v45 = vmax.f32 %v1283_v35, %v1391_v40  ;;  %v1309_v9 = vadd.f32 %v1308_v41, %v1296_v59  ;;  %v3959_v35 = vld [vmem:[#allocation11 + $0x310] sm:$0xf0]  ;;  %v4516_v59 = vld [vmem:[#allocation11 + $0x8c] sm:$0xf] }
 0x169   :  { %2287 = vmatpush.bf16.msrb.mxu0 %v3646_v37  ;;  %v1271_v46 = vpop.f32.mrf.mxu2  ;;  %v3679_v37 = vld [vmem:[#allocation11 + $0xd8] sm:$0xf0]  ;;  %v3962_v57 = vor.u32 %v4595_v34, %v3959_v35  ;;  %v4552_v34 = vld [vmem:[#allocation11 + $0x1ac] sm:$0xf] }
 0x16a   :  { %v5026_v51 = vpack.c.bf16 %v1395_v45, %v1395_v45  ;;  %v1284_v53 = vpop.f32.mrf.mxu3  ;;  %v3682_v43 = vor.u32 %v4524_v36, %v3679_v37  ;;  %v4542_v45 = vld [vmem:[#allocation11 + $0x154] sm:$0xf0]  ;;  %v3791_v35 = vld [vmem:[#allocation11 + $0x1b8] sm:$0xf0] }
 0x16b   :  { %2278 = vmatpush.bf16.msra.mxu3 %v3962_v57  ;;  %v3742_v49 = vor.u32 %v4542_v45, %v3741_v44  ;;  %v3583_v44 = vld [vmem:[#allocation11 + $0x18] sm:$0xf0]  ;;  %v4548_v45 = vld [vmem:[#allocation11 + $0x18c] sm:$0xf] }
 0x16c   :  { %2201 = vmatmul.bf16.vlgmr.msrb.gmra.mxu1 %v5026_v51  ;;  %2240 = vmatmul.bf16.vlgmr.msra.gmra.mxu0 %v5022_v4  ;;  %v1297_v60 = vpop.f32.mrf.mxu0 }
 0x16d   :  { %2288 = vmatpush.bf16.msrb.mxu0 %v3630_v22  ;;  %2297 = vmatpush.bf16.msrb.mxu1 %v3822_v47  ;;  %v4590_v22 = vld [vmem:[#allocation11 + $0x2d4] sm:$0xf0]  ;;  %v4520_v47 = vld [vmem:[#allocation11 + $0xac] sm:$0xf]  ;;  %v3647_v60 = vld [vmem:[#allocation11 + $0x98] sm:$0xf0] }
 0x16e   :  { %v3934_v50 = vor.u32 %v4590_v22, %v3933_v16  ;;  %v3666_v53 = vor.u32 %v4520_v47, %v3663_v48  ;;  %v3650_v0 = vor.u32 %v4516_v59, %v3647_v60  ;;  %v3775_v16 = vld [vmem:[#allocation11 + $0x198] sm:$0xf0]  ;;  %v4592_v60 = vld [vmem:[#allocation11 + $0x2ec] sm:$0xf] }
 0x16f   :  { %v1310_v2 = vpop.f32.mrf.mxu1  ;;  %v3759_v59 = vld [vmem:[#allocation11 + $0x178] sm:$0xf0] }
 0x170   :  { %v4534_v2 = vld [vmem:[#allocation11 + $0x114] sm:$0xf0] }
 0x171   :  { %2289 = vmatpush.bf16.msrb.mxu0 %v3614_v61  ;;  %2298 = vmatpush.bf16.msrb.mxu1 %v3806_v62  ;;  %v1321_v15 = vpop.f32.mrf.mxu2  ;;  %v3726_v61 = vor.u32 %v4538_v55, %v3725_v54  ;;  %v3710_v13 = vor.u32 %v4534_v2, %v3709_v1  ;;  %v3778_v55 = vor.u32 %v4548_v45, %v3775_v16  ;;  %v3981_v45 = vld [vmem:[#allocation11 + $0x328] sm:$0xf]  ;;  %v4602_v16 = vld [vmem:[#allocation11 + $0x334] sm:$0xf0] }
 0x172   :  { %v1334_v17 = vpop.f32.mrf.mxu3  ;;  %v1322_v21 = vadd.f32 %v1321_v15, %v1309_v9  ;;  %v3631_v9 = vld [vmem:[#allocation11 + $0x78] sm:$0xf0] }
 0x173   :  { %v3634_v15 = vor.u32 %v4512_v7, %v3631_v9  ;;  %v4061_v7 = vld [vmem:[#allocation11 + $0x3c8] sm:$0xf]  ;;  %v4622_v9 = vld [vmem:[#allocation11 + $0x3d4] sm:$0xf0] }
 0x174   :  { %v1335_v26 = vadd.f32 %v1334_v17, %v1322_v21  ;;  %v3885_v17 = vld [vmem:[#allocation11 + $0x268] sm:$0xf]  ;;  %v3615_v21 = vld [vmem:[#allocation11 + $0x58] sm:$0xf0] }
 0x175   :  { %2290 = vmatpush.bf16.msrb.mxu0 %v3598_v10  ;;  %2299 = vmatpush.bf16.msrb.mxu1 %v3790_v11  ;;  %v4560_v10 = vld [vmem:[#allocation11 + $0x1ec] sm:$0xf]  ;;  %v3823_v11 = vld [vmem:[#allocation11 + $0x1f8] sm:$0xf0]  ;;  %v3618_v8 = vor.u32 %v4508_v20, %v3615_v21 }
 0x176   :  { %v1392_v52 = vmul.f32 0.01, %v1335_v26  ;;  %v3826_v18 = vor.u32 %v4560_v10, %v3823_v11  ;;  %v4540_v10 = vld [vmem:[#allocation11 + $0x14c] sm:$0xf]  ;;  %v3743_v11 = vld [vmem:[#allocation11 + $0x158] sm:$0xf0] }
 0x177   :  { %v4536_v20 = vld [vmem:[#allocation11 + $0x12c] sm:$0xf]  ;;  %v3727_v21 = vld [vmem:[#allocation11 + $0x138] sm:$0xf0] }
 0x178   :  { %v1396_v38 = vmax.f32 %v1335_v26, %v1392_v52 }
 0x179   :  { %2291 = vmatpush.bf16.msrb.mxu0 %v3582_v27  ;;  %2300 = vmatpush.bf16.msrb.mxu1 %v3774_v28  ;;  %v1323_v40 = vpop.f32.mrf.mxu2  ;;  %v3886_v27 = vor.u32 %v4578_v19, %v3885_v17  ;;  %v3869_v28 = vld [vmem:[#allocation11 + $0x248] sm:$0xf]  ;;  %v4618_v19 = vld [vmem:[#allocation11 + $0x3b4] sm:$0xf0] }
 0x17a   :  { %v1336_v41 = vpop.f32.mrf.mxu3  ;;  %v5030_v46 = vpack.c.bf16 %v1396_v38, %v1396_v38  ;;  %v3870_v37 = vor.u32 %v4574_v31, %v3869_v28  ;;  %v3853_v38 = vld [vmem:[#allocation11 + $0x228] sm:$0xf]  ;;  %v4532_v28 = vld [vmem:[#allocation11 + $0x10c] sm:$0xf]  ;;  %v3903_v31 = vld [vmem:[#allocation11 + $0x298] sm:$0xf0] }
 0x17b   :  { %v3794_v41 = vor.u32 %v4552_v34, %v3791_v35  ;;  %v4013_v35 = vld [vmem:[#allocation11 + $0x368] sm:$0xf] }
 0x17c   :  { %2253 = vmatmul.bf16.vlgmr.msra.gmra.mxu1 %v5026_v51  ;;  %2292 = vmatmul.bf16.vlgmr.msrb.gmra.mxu0 %v5022_v4 }
 0x17d   :  { %2336 = vmatpush.bf16.msra.mxu0 %v3698_v32  ;;  %2214 = vmatmul.bf16.vlgmr.msrb.gmra.mxu2 %v5030_v46  ;;  %v4504_v32 = vld [vmem:[#allocation11 + $0x2c] sm:$0xf] }
 0x17e   :  { %2301 = vmatpush.bf16.msrb.mxu1 %v3758_v39  ;;  %2310 = vmatpush.bf16.msrb.mxu2 %v3950_v42  ;;  %v3602_v57 = vor.u32 %v4504_v32, %v3599_v33  ;;  %v4570_v42 = vld [vmem:[#allocation11 + $0x234] sm:$0xf0] }
 0x17f   :  { %v3854_v47 = vor.u32 %v4570_v42, %v3853_v38  ;;  %v3871_v42 = vld [vmem:[#allocation11 + $0x258] sm:$0xf0] }
 0x181   :  { %2337 = vmatpush.bf16.msra.mxu0 %v3682_v43  ;;  %v4500_v43 = vld [vmem:[#allocation11 + $0xc] sm:$0xf] }
 0x182   :  { %2302 = vmatpush.bf16.msrb.mxu1 %v3742_v49  ;;  %2311 = vmatpush.bf16.msrb.mxu2 %v3934_v50  ;;  %v3586_v48 = vor.u32 %v4500_v43, %v3583_v44  ;;  %v3837_v49 = vld [vmem:[#allocation11 + $0x208] sm:$0xf]  ;;  %v4566_v50 = vld [vmem:[#allocation11 + $0x214] sm:$0xf0] }
 0x184   :  { %v1347_v62 = vpop.f32.mrf.mxu0 }
 0x185   :  { %2338 = vmatpush.bf16.msra.mxu0 %v3666_v53  ;;  %v1348_v25 = vadd.f32 %v1347_v62, %v537_v12  ;;  %v4077_v53 = vld [vmem:[#allocation11 + $0x3e8] sm:$0xf]  ;;  %v4588_v12 = vld [vmem:[#allocation11 + $0x2cc] sm:$0xf] }
 0x186   :  { %2303 = vmatpush.bf16.msrb.mxu1 %v3726_v61  ;;  %2312 = vmatpush.bf16.msrb.mxu2 %v3918_v63  ;;  %v3951_v61 = vld [vmem:[#allocation11 + $0x2f8] sm:$0xf0]  ;;  %v4078_v1 = vor.u32 %v4626_v56, %v4077_v53  ;;  %v4598_v53 = vld [vmem:[#allocation11 + $0x314] sm:$0xf0]  ;;  %v4624_v56 = vld [vmem:[#allocation11 + $0x3ec] sm:$0xf] }
 0x187   :  { %v1360_v5 = vpop.f32.mrf.mxu1  ;;  %v3954_v6 = vor.u32 %v4592_v60, %v3951_v61  ;;  %v4620_v61 = vld [vmem:[#allocation11 + $0x3cc] sm:$0xf] }
 0x188   :  { %v1361_v52 = vadd.f32 %v1360_v5, %v1348_v25  ;;  %v3762_v5 = vor.u32 %v4544_v58, %v3759_v59  ;;  %v4079_v58 = vld [vmem:[#allocation11 + $0x3f8] sm:$0xf0] }
 0x189   :  { %2339 = vmatpush.bf16.msra.mxu0 %v3650_v0  ;;  %v3838_v0 = vor.u32 %v4566_v50, %v3837_v49  ;;  %v3965_v50 = vld [vmem:[#allocation11 + $0x308] sm:$0xf]  ;;  %v4082_v60 = vor.u32 %v4624_v56, %v4079_v58  ;;  %v4181_v56 = vld [vmem:[#allocation13 + $0xc0] sm:$0xf] }
 0x18a   :  { %2304 = vmatpush.bf16.msrb.mxu1 %v3710_v13  ;;  %2313 = vmatpush.bf16.msrb.mxu2 %v3902_v14  ;;  %v3935_v13 = vld [vmem:[#allocation11 + $0x2d8] sm:$0xf0]  ;;  %v4062_v14 = vor.u32 %v4622_v9, %v4061_v7  ;;  %v3966_v59 = vor.u32 %v4598_v53, %v3965_v50  ;;  %v4608_v9 = vld [vmem:[#allocation11 + $0x36c] sm:$0xf] }
 0x18b   :  { %v3938_v17 = vor.u32 %v4588_v12, %v3935_v13  ;;  %v4604_v12 = vld [vmem:[#allocation11 + $0x34c] sm:$0xf]  ;;  %v3999_v13 = vld [vmem:[#allocation11 + $0x358] sm:$0xf0] }
 0x18c   :  { %v1349_v26 = vpop.f32.mrf.mxu0 }
 0x18d   :  { %2340 = vmatpush.bf16.msra.mxu0 %v3634_v15  ;;  %2305 = vmatmul.bf16.vlgmr.msrb.gmra.mxu1 %v5026_v51  ;;  %v3746_v15 = vor.u32 %v4540_v10, %v3743_v11  ;;  %v3922_v26 = vor.u32 %v4584_v23, %v3919_v24  ;;  %v4015_v10 = vld [vmem:[#allocation11 + $0x378] sm:$0xf0]  ;;  %v4642_v23 = vld [vmem:[#allocation13 + $0x74] sm:$0xf0] }
 0x18e   :  { %2349 = vmatpush.bf16.msra.mxu1 %v3826_v18  ;;  %2266 = vmatmul.bf16.vlgmr.msra.gmra.mxu2 %v5030_v46  ;;  %v4045_v18 = vld [vmem:[#allocation11 + $0x3a8] sm:$0xf]  ;;  %v4018_v11 = vor.u32 %v4608_v9, %v4015_v10 }
 0x18f   :  { %v1362_v29 = vpop.f32.mrf.mxu1  ;;  %2314 = vmatpush.bf16.msrb.mxu2 %v3886_v27  ;;  %v4046_v25 = vor.u32 %v4618_v19, %v4045_v18  ;;  %v4029_v27 = vld [vmem:[#allocation11 + $0x388] sm:$0xf]  ;;  %v4596_v19 = vld [vmem:[#allocation11 + $0x30c] sm:$0xf] }
 0x190   :  { %v3711_v29 = vld [vmem:[#allocation11 + $0x118] sm:$0xf0] }
 0x191   :  { %v1373_v36 = vpop.f32.mrf.mxu2  ;;  %2341 = vmatpush.bf16.msra.mxu0 %v3618_v8  ;;  %v4614_v8 = vld [vmem:[#allocation11 + $0x394] sm:$0xf0]  ;;  %v3714_v33 = vor.u32 %v4532_v28, %v3711_v29 }
 0x192   :  { %v1374_v39 = vadd.f32 %v1373_v36, %v1361_v52  ;;  %v1386_v40 = vpop.f32.mrf.mxu3  ;;  %2350 = vmatpush.bf16.msra.mxu1 %v3810_v30  ;;  %v4580_v30 = vld [vmem:[#allocation11 + $0x28c] sm:$0xf]  ;;  %v4030_v32 = vor.u32 %v4614_v8, %v4029_v27  ;;  %v4610_v52 = vld [vmem:[#allocation11 + $0x374] sm:$0xf0]  ;;  %v4125_v8 = vld [vmem:[#allocation13 + $0x50] sm:$0xf] }
 0x193   :  { %2315 = vmatpush.bf16.msrb.mxu2 %v3870_v37  ;;  %v3906_v34 = vor.u32 %v4580_v30, %v3903_v31  ;;  %v4576_v36 = vld [vmem:[#allocation11 + $0x26c] sm:$0xf]  ;;  %v3887_v37 = vld [vmem:[#allocation11 + $0x278] sm:$0xf0]  ;;  %v4638_v28 = vld [vmem:[#allocation13 + $0x54] sm:$0xf0] }
 0x194   :  { %v1387_v22 = vadd.f32 %v1386_v40, %v1374_v39  ;;  %v3890_v38 = vor.u32 %v4576_v36, %v3887_v37  ;;  %v3997_v39 = vld [vmem:[#allocation11 + $0x348] sm:$0xf]  ;;  %v4606_v40 = vld [vmem:[#allocation11 + $0x354] sm:$0xf0]  ;;  %v4126_v29 = vor.u32 %v4638_v28, %v4125_v8  ;;  %v4117_v31 = vld [vmem:[#allocation13 + $0x40] sm:$0xf] }
 0x195   :  { %2342 = vmatpush.bf16.msra.mxu0 %v3602_v57  ;;  %v4014_v57 = vor.u32 %v4610_v52, %v4013_v35  ;;  %v3998_v43 = vor.u32 %v4606_v40, %v3997_v39  ;;  %v4634_v35 = vld [vmem:[#allocation13 + $0x34] sm:$0xf0]  ;;  %v4205_v52 = vld [vmem:[#allocation13 + $0xf0] sm:$0xf]  ;;  %v4101_v39 = vld [vmem:[#allocation13 + $0x20] sm:$0xf] }
 0x196   :  { %v1393_v54 = vmul.f32 0.01, %v1387_v22  ;;  %2351 = vmatpush.bf16.msra.mxu1 %v3794_v41  ;;  %v4572_v41 = vld [vmem:[#allocation11 + $0x24c] sm:$0xf]  ;;  %v4632_v40 = vld [vmem:[#allocation13 + $0x24] sm:$0xf0] }
 0x197   :  { %2316 = vmatpush.bf16.msrb.mxu2 %v3854_v47  ;;  %v3874_v44 = vor.u32 %v4572_v41, %v3871_v42  ;;  %v3855_v47 = vld [vmem:[#allocation11 + $0x238] sm:$0xf0]  ;;  %v4197_v41 = vld [vmem:[#allocation13 + $0xe0] sm:$0xf]  ;;  %v4102_v42 = vor.u32 %v4632_v40, %v4101_v39  ;;  %v4670_v8 = vld [vmem:[#allocation13 + $0x154] sm:$0xf0] }
 0x198   :  { %v1397_v62 = vmax.f32 %v1387_v22, %v1393_v54  ;;  %v4568_v22 = vld [vmem:[#allocation11 + $0x22c] sm:$0xf]  ;;  %v4635_v28 = vld [vmem:[#allocation13 + $0x44] sm:$0xf]  ;;  %v4111_v39 = vld [vmem:[#allocation13 + $0x38] sm:$0xf0] }
 0x199   :  { %v1375_v63 = vpop.f32.mrf.mxu2  ;;  %2343 = vmatpush.bf16.msra.mxu0 %v3586_v48  ;;  %v3982_v48 = vor.u32 %v4602_v16, %v3981_v45  ;;  %v3858_v49 = vor.u32 %v4568_v22, %v3855_v47  ;;  %v4564_v54 = vld [vmem:[#allocation11 + $0x20c] sm:$0xf]  ;;  %v4093_v45 = vld [vmem:[#allocation13 + $0x10] sm:$0xf]  ;;  %v4630_v16 = vld [vmem:[#allocation13 + $0x14] sm:$0xf0] }
 0x19a   :  { %v5038_v2 = vpack.c.bf16 %v1397_v62, %v1397_v62  ;;  %v1388_v3 = vpop.f32.mrf.mxu3  ;;  %2352 = vmatpush.bf16.msra.mxu1 %v3778_v55  ;;  %v3839_v55 = vld [vmem:[#allocation11 + $0x218] sm:$0xf0]  ;;  %v4189_v22 = vld [vmem:[#allocation13 + $0xd0] sm:$0xf]  ;;  %v4094_v47 = vor.u32 %v4630_v16, %v4093_v45  ;;  %v4666_v16 = vld [vmem:[#allocation13 + $0x134] sm:$0xf0] }
 0x19b   :  { %2317 = vmatpush.bf16.msrb.mxu2 %v3838_v0  ;;  %v4063_v62 = vld [vmem:[#allocation11 + $0x3d8] sm:$0xf0]  ;;  %v4616_v0 = vld [vmem:[#allocation11 + $0x3ac] sm:$0xf]  ;;  %v4237_v45 = vld [vmem:[#allocation13 + $0x130] sm:$0xf] }
 0x19c   :  { %2227 = vmatmul.bf16.vlgmr.msrb.gmra.mxu3 %v5038_v2  ;;  %2344 = vmatmul.bf16.vlgmr.msra.gmra.mxu0 %v5022_v4  ;;  %v3730_v4 = vor.u32 %v4536_v20, %v3727_v21  ;;  %v4066_v63 = vor.u32 %v4620_v61, %v4063_v62  ;;  %v4141_v21 = vld [vmem:[#allocation13 + $0x70] sm:$0xf]  ;;  %v4143_v61 = vld [vmem:[#allocation13 + $0x78] sm:$0xf0] }
 0x19d   :  { %2323 = vmatpush.bf16.msrb.mxu3 %v4078_v1  ;;  %v4047_v1 = vld [vmem:[#allocation11 + $0x3b8] sm:$0xf0]  ;;  %v4142_v24 = vor.u32 %v4642_v23, %v4141_v21  ;;  %v4157_v23 = vld [vmem:[#allocation13 + $0x90] sm:$0xf] }
 0x19e   :  { %2353 = vmatpush.bf16.msra.mxu1 %v3762_v5  ;;  %2318 = vmatmul.bf16.vlgmr.msrb.gmra.mxu2 %v5030_v46  ;;  %v4050_v3 = vor.u32 %v4616_v0, %v4047_v1  ;;  %v4612_v5 = vld [vmem:[#allocation11 + $0x38c] sm:$0xf]  ;;  %v4650_v0 = vld [vmem:[#allocation13 + $0xb4] sm:$0xf0]  ;;  %v4269_v1 = vld [vmem:[#allocation13 + $0x170] sm:$0xf] }
 0x19f   :  { %2362 = vmatpush.bf16.msra.mxu2 %v3954_v6  ;;  %v4031_v6 = vld [vmem:[#allocation11 + $0x398] sm:$0xf0]  ;;  %2790 = vmatpush.bf16.msrb.mxu0 %v4142_v24  ;;  %v4646_v24 = vld [vmem:[#allocation13 + $0x94] sm:$0xf0] }
 0x1a0   :  { %v4034_v7 = vor.u32 %v4612_v5, %v4031_v6  ;;  %v4674_v5 = vld [vmem:[#allocation13 + $0x174] sm:$0xf0]  ;;  %v4639_v6 = vld [vmem:[#allocation13 + $0x64] sm:$0xf] }
 0x1a1   :  { %2324 = vmatpush.bf16.msrb.mxu3 %v4062_v14  ;;  %v4002_v14 = vor.u32 %v4604_v12, %v3999_v13  ;;  %v4165_v13 = vld [vmem:[#allocation13 + $0xa0] sm:$0xf] }
 0x1a2   :  { %2354 = vmatpush.bf16.msra.mxu1 %v3746_v15  ;;  %v4600_v15 = vld [vmem:[#allocation11 + $0x32c] sm:$0xf] }
 0x1a3   :  { %2363 = vmatpush.bf16.msra.mxu2 %v3938_v17  ;;  %v3983_v17 = vld [vmem:[#allocation11 + $0x338] sm:$0xf0] }
 0x1a4   :  { %v3986_v18 = vor.u32 %v4600_v15, %v3983_v17  ;;  %v4261_v15 = vld [vmem:[#allocation13 + $0x160] sm:$0xf] }
 0x1a5   :  { %2325 = vmatpush.bf16.msrb.mxu3 %v4046_v25 }
 0x1a6   :  { %2355 = vmatpush.bf16.msra.mxu1 %v3730_v4  ;;  %v4133_v4 = vld [vmem:[#allocation13 + $0x60] sm:$0xf] }
 0x1a7   :  { %2364 = vmatpush.bf16.msra.mxu2 %v3922_v26  ;;  %v4640_v26 = vld [vmem:[#allocation13 + $0x64] sm:$0xf0] }
 0x1a8   :  { %v4134_v27 = vor.u32 %v4640_v26, %v4133_v4  ;;  %v4253_v4 = vld [vmem:[#allocation13 + $0x150] sm:$0xf] }
 0x1a9   :  { %2326 = vmatpush.bf16.msrb.mxu3 %v4030_v32  ;;  %v4636_v32 = vld [vmem:[#allocation13 + $0x44] sm:$0xf0] }
 0x1aa   :  { %2356 = vmatpush.bf16.msra.mxu1 %v3714_v33  ;;  %2791 = vmatpush.bf16.msrb.mxu0 %v4134_v27  ;;  %v4118_v33 = vor.u32 %v4636_v32, %v4117_v31  ;;  %v4158_v27 = vor.u32 %v4646_v24, %v4157_v23  ;;  %v4254_v32 = vor.u32 %v4670_v8, %v4253_v4  ;;  %v4333_v23 = vld [vmem:[#allocation13 + $0x1f0] sm:$0xf]  ;;  %v4690_v4 = vld [vmem:[#allocation13 + $0x1f4] sm:$0xf0]  ;;  %v4175_v8 = vld [vmem:[#allocation13 + $0xb8] sm:$0xf0] }
 0x1ab   :  { %2365 = vmatpush.bf16.msra.mxu2 %v3906_v34  ;;  %v4109_v34 = vld [vmem:[#allocation13 + $0x30] sm:$0xf] }
 0x1ac   :  { %2279 = vmatmul.bf16.vlgmr.msra.gmra.mxu3 %v5038_v2  ;;  %v4110_v36 = vor.u32 %v4634_v35, %v4109_v34  ;;  %v4149_v34 = vld [vmem:[#allocation13 + $0x80] sm:$0xf]  ;;  %v4644_v35 = vld [vmem:[#allocation13 + $0x84] sm:$0xf0] }
 0x1ad   :  { %2327 = vmatpush.bf16.msrb.mxu3 %v4014_v57  ;;  %2357 = vmatmul.bf16.vlgmr.msra.gmra.mxu1 %v5026_v51  ;;  %v3842_v51 = vor.u32 %v4564_v54, %v3839_v55  ;;  %v4085_v54 = vld [vmem:[#allocation13] sm:$0xf]  ;;  %v4628_v55 = vld [vmem:[#allocation13 + $0x4] sm:$0xf0] }
 0x1ae   :  { %2792 = vmatpush.bf16.msrb.mxu0 %v4126_v29  ;;  %v4086_v58 = vor.u32 %v4628_v55, %v4085_v54  ;;  %v4119_v29 = vld [vmem:[#allocation13 + $0x48] sm:$0xf0] }
 0x1af   :  { %2366 = vmatpush.bf16.msra.mxu2 %v3890_v38  ;;  %v4199_v55 = vld [vmem:[#allocation13 + $0xe8] sm:$0xf0] }
 0x1b1   :  { %2328 = vmatpush.bf16.msrb.mxu3 %v3998_v43  ;;  %v4656_v43 = vld [vmem:[#allocation13 + $0xe4] sm:$0xf0] }
 0x1b2   :  { %2793 = vmatpush.bf16.msrb.mxu0 %v4118_v33  ;;  %v4122_v33 = vor.u32 %v4635_v28, %v4119_v29  ;;  %v4334_v28 = vor.u32 %v4690_v4, %v4333_v23  ;;  %v4680_v23 = vld [vmem:[#allocation13 + $0x1a4] sm:$0xf0]  ;;  %v4231_v4 = vld [vmem:[#allocation13 + $0x128] sm:$0xf0] }
 0x1b3   :  { %2367 = vmatpush.bf16.msra.mxu2 %v3874_v44  ;;  %v4198_v44 = vor.u32 %v4656_v43, %v4197_v41  ;;  %v4207_v43 = vld [vmem:[#allocation13 + $0xf8] sm:$0xf0] }
 0x1b5   :  { %2329 = vmatpush.bf16.msrb.mxu3 %v3982_v48  ;;  %v4654_v48 = vld [vmem:[#allocation13 + $0xd4] sm:$0xf0] }
 0x1b6   :  { %2794 = vmatpush.bf16.msrb.mxu0 %v4110_v36  ;;  %v4190_v53 = vor.u32 %v4654_v48, %v4189_v22  ;;  %v4150_v36 = vor.u32 %v4644_v35, %v4149_v34  ;;  %v4631_v48 = vld [vmem:[#allocation13 + $0x24] sm:$0xf]  ;;  %v4688_v35 = vld [vmem:[#allocation13 + $0x1e4] sm:$0xf0] }
 0x1b7   :  { %2368 = vmatpush.bf16.msra.mxu2 %v3858_v49 }
 0x1b9   :  { %2330 = vmatpush.bf16.msrb.mxu3 %v3966_v59  ;;  %v4652_v59 = vld [vmem:[#allocation13 + $0xc4] sm:$0xf0] }
 0x1ba   :  { %2795 = vmatpush.bf16.msrb.mxu0 %v4102_v42  ;;  %v4657_v42 = vld [vmem:[#allocation13 + $0xf4] sm:$0xf] }
 0x1bb   :  { %2369 = vmatpush.bf16.msra.mxu2 %v3842_v51  ;;  %v4182_v51 = vor.u32 %v4652_v59, %v4181_v56  ;;  %v4664_v59 = vld [vmem:[#allocation13 + $0x124] sm:$0xf0] }
 0x1bc   :  { %2331 = vmatmul.bf16.vlgmr.msrb.gmra.mxu3 %v5038_v2 }
 0x1bd   :  { %2375 = vmatpush.bf16.msra.mxu3 %v4082_v60  ;;  %v4641_v60 = vld [vmem:[#allocation13 + $0x74] sm:$0xf] }
 0x1be   :  { %2370 = vmatmul.bf16.vlgmr.msra.gmra.mxu2 %v5030_v46  ;;  %v3967_v46 = vld [vmem:[#allocation11 + $0x318] sm:$0xf0]  ;;  %2796 = vmatpush.bf16.msrb.mxu0 %v4094_v47  ;;  %v4146_v62 = vor.u32 %v4641_v60, %v4143_v61  ;;  %v4238_v47 = vor.u32 %v4666_v16, %v4237_v45  ;;  %v4629_v60 = vld [vmem:[#allocation13 + $0x14] sm:$0xf]  ;;  %v4317_v16 = vld [vmem:[#allocation13 + $0x1d0] sm:$0xf] }
 0x1bf   :  { %v3970_v20 = vor.u32 %v4596_v19, %v3967_v46  ;;  %v4637_v19 = vld [vmem:[#allocation13 + $0x54] sm:$0xf]  ;;  %v4127_v46 = vld [vmem:[#allocation13 + $0x58] sm:$0xf0] }
 0x1c0   :  { %v4130_v21 = vor.u32 %v4637_v19, %v4127_v46  ;;  %v4095_v61 = vld [vmem:[#allocation13 + $0x18] sm:$0xf0] }
 0x1c1   :  { %2376 = vmatpush.bf16.msra.mxu3 %v4066_v63  ;;  %v4173_v63 = vld [vmem:[#allocation13 + $0xb0] sm:$0xf] }
 0x1c2   :  { %2797 = vmatpush.bf16.msrb.mxu0 %v4086_v58  ;;  %v4229_v58 = vld [vmem:[#allocation13 + $0x120] sm:$0xf] }
 0x1c5   :  { %2377 = vmatpush.bf16.msra.mxu3 %v4050_v3  ;;  %v4174_v3 = vor.u32 %v4650_v0, %v4173_v63  ;;  %v4098_v63 = vor.u32 %v4629_v60, %v4095_v61  ;;  %v4191_v0 = vld [vmem:[#allocation13 + $0xd8] sm:$0xf0]  ;;  %v4684_v60 = vld [vmem:[#allocation13 + $0x1c4] sm:$0xf0] }
 0x1c6   :  { %2842 = vmatpush.bf16.msra.mxu0 %v4146_v62  ;;  %v4653_v62 = vld [vmem:[#allocation13 + $0xd4] sm:$0xf] }
 0x1c9   :  { %2378 = vmatpush.bf16.msra.mxu3 %v4034_v7  ;;  %v4135_v7 = vld [vmem:[#allocation13 + $0x68] sm:$0xf0] }
 0x1ca   :  { %v4138_v12 = vor.u32 %v4639_v6, %v4135_v7  ;;  %v4662_v6 = vld [vmem:[#allocation13 + $0x114] sm:$0xf0] }
 0x1cc   :  { %2843 = vmatpush.bf16.msra.mxu0 %v4138_v12  ;;  %v4627_v12 = vld [vmem:[#allocation13 + $0x4] sm:$0xf] }
 0x1cd   :  { %2379 = vmatpush.bf16.msra.mxu3 %v4018_v11  ;;  %v4270_v11 = vor.u32 %v4674_v5, %v4269_v1  ;;  %v4194_v1 = vor.u32 %v4653_v62, %v4191_v0  ;;  %v4221_v5 = vld [vmem:[#allocation13 + $0x110] sm:$0xf]  ;;  %v4643_v62 = vld [vmem:[#allocation13 + $0x84] sm:$0xf] }
 0x1ce   :  { %v4667_v0 = vld [vmem:[#allocation13 + $0x144] sm:$0xf] }
 0x1cf   :  { %2816 = vmatpush.bf16.msrb.mxu2 %v4270_v11  ;;  %v4222_v11 = vor.u32 %v4662_v6, %v4221_v5  ;;  %v4247_v6 = vld [vmem:[#allocation13 + $0x148] sm:$0xf0] }
 0x1d0   :  { %2844 = vmatpush.bf16.msra.mxu0 %v4130_v21  ;;  %v4660_v21 = vld [vmem:[#allocation13 + $0x104] sm:$0xf0] }
 0x1d1   :  { %2380 = vmatpush.bf16.msra.mxu3 %v4002_v14  ;;  %v4648_v14 = vld [vmem:[#allocation13 + $0xa4] sm:$0xf0] }
 0x1d2   :  { %v4166_v17 = vor.u32 %v4648_v14, %v4165_v13  ;;  %v4087_v13 = vld [vmem:[#allocation13 + $0x8] sm:$0xf0]  ;;  %v4651_v14 = vld [vmem:[#allocation13 + $0xc4] sm:$0xf] }
 0x1d4   :  { %2845 = vmatpush.bf16.msra.mxu0 %v4122_v33 }
 0x1d5   :  { %2381 = vmatpush.bf16.msra.mxu3 %v3986_v18  ;;  %v4672_v18 = vld [vmem:[#allocation13 + $0x164] sm:$0xf0] }
 0x1d9   :  { %2382 = vmatpush.bf16.msra.mxu3 %v3970_v20  ;;  %v5048_v25 = vpop.f32.mrf.mxu0  ;;  %v4262_v20 = vor.u32 %v4672_v18, %v4261_v15  ;;  %v4183_v18 = vld [vmem:[#allocation13 + $0xc8] sm:$0xf0] }
 0x1da   :  { %v4186_v46 = vor.u32 %v4651_v14, %v4183_v18  ;;  %v4301_v14 = vld [vmem:[#allocation13 + $0x1b0] sm:$0xf] }
 0x1db   :  { %2817 = vmatpush.bf16.msrb.mxu2 %v4262_v20  ;;  %v4213_v20 = vld [vmem:[#allocation13 + $0x100] sm:$0xf] }
 0x1dc   :  { %2383 = vmatmul.bf16.vlgmr.msra.gmra.mxu3 %v5038_v2  ;;  %v4658_v2 = vld [vmem:[#allocation13 + $0xf4] sm:$0xf0]  ;;  %v4214_v24 = vor.u32 %v4660_v21, %v4213_v20  ;;  %v4293_v21 = vld [vmem:[#allocation13 + $0x1a0] sm:$0xf] }
 0x1dd   :  { %v4206_v38 = vor.u32 %v4658_v2, %v4205_v52  ;;  %v4245_v52 = vld [vmem:[#allocation13 + $0x140] sm:$0xf]  ;;  %v4668_v2 = vld [vmem:[#allocation13 + $0x144] sm:$0xf0]  ;;  %2829 = vmatpush.bf16.msrb.mxu3 %v4334_v28  ;;  %v4294_v28 = vor.u32 %v4680_v23, %v4293_v21  ;;  %v4675_v23 = vld [vmem:[#allocation13 + $0x184] sm:$0xf] }
 0x1de   :  { %v4246_v40 = vor.u32 %v4668_v2, %v4245_v52  ;;  %v4647_v52 = vld [vmem:[#allocation13 + $0xa4] sm:$0xf] }
 0x1df   :  { %2803 = vmatpush.bf16.msrb.mxu1 %v4206_v38  ;;  %2818 = vmatpush.bf16.msrb.mxu2 %v4254_v32  ;;  %v4633_v38 = vld [vmem:[#allocation13 + $0x34] sm:$0xf]  ;;  %v4325_v32 = vld [vmem:[#allocation13 + $0x1e0] sm:$0xf] }
 0x1e0   :  { %v4114_v41 = vor.u32 %v4633_v38, %v4111_v39  ;;  %v4326_v38 = vor.u32 %v4688_v35, %v4325_v32  ;;  %v4671_v39 = vld [vmem:[#allocation13 + $0x164] sm:$0xf]  ;;  %v4678_v32 = vld [vmem:[#allocation13 + $0x194] sm:$0xf0]  ;;  %v4661_v35 = vld [vmem:[#allocation13 + $0x114] sm:$0xf] }
 0x1e1   :  { %v2191_v30 = vpop.f32.mrf.mxu0 }
 0x1e2   :  { %2846 = vmatpush.bf16.msra.mxu0 %v4114_v41  ;;  %2830 = vmatpush.bf16.msrb.mxu3 %v4326_v38 }
 0x1e3   :  { %2804 = vmatpush.bf16.msrb.mxu1 %v4198_v44  ;;  %v4210_v44 = vor.u32 %v4657_v42, %v4207_v43  ;;  %2819 = vmatpush.bf16.msrb.mxu2 %v4246_v40  ;;  %v4263_v40 = vld [vmem:[#allocation13 + $0x168] sm:$0xf0] }
 0x1e4   :  { %v4266_v43 = vor.u32 %v4671_v39, %v4263_v40  ;;  %v4277_v39 = vld [vmem:[#allocation13 + $0x180] sm:$0xf]  ;;  %v4676_v40 = vld [vmem:[#allocation13 + $0x184] sm:$0xf0] }
 0x1e7   :  { %2805 = vmatpush.bf16.msrb.mxu1 %v4190_v53  ;;  %2820 = vmatpush.bf16.msrb.mxu2 %v4238_v47 }
 0x1e9   :  { %v5050_v37 = vpop.f32.mrf.mxu1  ;;  %v5052_v57 = vpop.f32.mrf.mxu0 }
 0x1eb   :  { %2806 = vmatpush.bf16.msrb.mxu1 %v4182_v51  ;;  %v4230_v51 = vor.u32 %v4664_v59, %v4229_v58 }
 0x1ed   :  { %2821 = vmatpush.bf16.msrb.mxu2 %v4230_v51 }
 0x1ef   :  { %2807 = vmatpush.bf16.msrb.mxu1 %v4174_v3  ;;  %v5065_v3 = vld [vmem:[%s5102_s6] sm:$0xf] }
 0x1f0   :  { %v1532_v19 = vperm.slane %v5065_v3, 0 }
 0x1f1   :  { %v2204_v49 = vpop.f32.mrf.mxu1  ;;  %v2243_v50 = vpop.f32.mrf.mxu0  ;;  %2822 = vmatpush.bf16.msrb.mxu2 %v4222_v11  ;;  %v4250_v11 = vor.u32 %v4667_v0, %v4247_v6  ;;  %v4311_v0 = vld [vmem:[#allocation13 + $0x1c8] sm:$0xf0] }
 0x1f2   :  { %v4103_v49 = vld [vmem:[#allocation13 + $0x28] sm:$0xf0]  ;;  %v4655_v50 = vld [vmem:[#allocation13 + $0xe4] sm:$0xf]  ;;  %v2190_v2 = vadd.f32 %v5048_v25, %v1532_v19  ;;  %v4665_v19 = vld [vmem:[#allocation13 + $0x134] sm:$0xf] }
 0x1f3   :  { %2808 = vmatpush.bf16.msrb.mxu1 %v4166_v17  ;;  %v4106_v54 = vor.u32 %v4631_v48, %v4103_v49  ;;  %v4202_v56 = vor.u32 %v4655_v50, %v4199_v55  ;;  %v4090_v17 = vor.u32 %v4627_v12, %v4087_v13  ;;  %v4645_v48 = vld [vmem:[#allocation13 + $0x94] sm:$0xf]  ;;  %v4159_v49 = vld [vmem:[#allocation13 + $0x98] sm:$0xf0]  ;;  %v1533_v12 = vperm.slane %v5065_v3, 1 }
 0x1f4   :  { %v4669_v50 = vld [vmem:[#allocation13 + $0x154] sm:$0xf]  ;;  %v4162_v55 = vor.u32 %v4645_v48, %v4159_v49  ;;  %v1534_v48 = vperm.slane %v5065_v3, 2 }
 0x1f5   :  { %2847 = vmatpush.bf16.msra.mxu0 %v4106_v54  ;;  %2823 = vmatpush.bf16.msrb.mxu2 %v4214_v24  ;;  %v4663_v24 = vld [vmem:[#allocation13 + $0x124] sm:$0xf] }
 0x1f7   :  { %2809 = vmatpush.bf16.msrb.mxu1 %v4158_v27  ;;  %v4649_v27 = vld [vmem:[#allocation13 + $0xb4] sm:$0xf] }
 0x1f8   :  { %v4178_v29 = vor.u32 %v4649_v27, %v4175_v8  ;;  %v2242_v27 = vadd.f32 %v5052_v57, %v1533_v12  ;;  %v4681_v12 = vld [vmem:[#allocation13 + $0x1b4] sm:$0xf] }
 0x1f9   :  { %v5054_v9 = vpop.f32.mrf.mxu1  ;;  %v5056_v10 = vpop.f32.mrf.mxu0  ;;  %2848 = vmatpush.bf16.msra.mxu0 %v4098_v63  ;;  %v4151_v63 = vld [vmem:[#allocation13 + $0x88] sm:$0xf0] }
 0x1fa   :  { %v4154_v5 = vor.u32 %v4643_v62, %v4151_v63  ;;  %v4683_v63 = vld [vmem:[#allocation13 + $0x1c4] sm:$0xf] }
 0x1fb   :  { %2810 = vmatpush.bf16.msrb.mxu1 %v4150_v36  ;;  %v4167_v36 = vld [vmem:[#allocation13 + $0xa8] sm:$0xf0]  ;;  %v4314_v6 = vor.u32 %v4683_v63, %v4311_v0 }
 0x1fc   :  { %v4170_v42 = vor.u32 %v4647_v52, %v4167_v36  ;;  %v4223_v52 = vld [vmem:[#allocation13 + $0x118] sm:$0xf0] }
 0x1fd   :  { %2849 = vmatpush.bf16.msra.mxu0 %v4090_v17  ;;  %v4226_v57 = vor.u32 %v4661_v35, %v4223_v52 }
 0x1ff   :  { %2855 = vmatpush.bf16.msra.mxu1 %v4210_v44  ;;  %v2203_v44 = vadd.f32 %v5050_v37, %v2190_v2  ;;  %v4309_v37 = vld [vmem:[#allocation13 + $0x1c0] sm:$0xf] }
 0x200   :  { %v5058_v26 = vpop.f32.mrf.mxu2  ;;  %v4310_v61 = vor.u32 %v4684_v60, %v4309_v37 }
 0x201   :  { %v2256_v30 = vpop.f32.mrf.mxu1  ;;  %v2295_v31 = vpop.f32.mrf.mxu0  ;;  %v2216_v45 = vadd.f32 %v5058_v26, %v2203_v44  ;;  %v4689_v44 = vld [vmem:[#allocation13 + $0x1f4] sm:$0xf] }
 0x202   :  { %v4673_v30 = vld [vmem:[#allocation13 + $0x174] sm:$0xf]  ;;  %v4271_v31 = vld [vmem:[#allocation13 + $0x178] sm:$0xf0] }
 0x203   :  { %2856 = vmatpush.bf16.msra.mxu1 %v4202_v56  ;;  %v4274_v34 = vor.u32 %v4673_v30, %v4271_v31  ;;  %v4255_v56 = vld [vmem:[#allocation13 + $0x158] sm:$0xf0]  ;;  %v4234_v30 = vor.u32 %v4663_v24, %v4231_v4  ;;  %v4285_v31 = vld [vmem:[#allocation13 + $0x190] sm:$0xf]  ;;  %v4279_v24 = vld [vmem:[#allocation13 + $0x188] sm:$0xf0] }
 0x204   :  { %v4258_v59 = vor.u32 %v4669_v50, %v4255_v56  ;;  %v4286_v2 = vor.u32 %v4678_v32, %v4285_v31  ;;  %v4282_v4 = vor.u32 %v4675_v23, %v4279_v24 }
 0x205   :  { %2868 = vmatpush.bf16.msra.mxu2 %v4274_v34  ;;  %v2255_v34 = vadd.f32 %v5054_v9, %v2242_v27  ;;  %v4278_v9 = vor.u32 %v4676_v40, %v4277_v39  ;;  %v1535_v27 = vperm.slane %v5065_v3, 3 }
 0x207   :  { %2857 = vmatpush.bf16.msra.mxu1 %v4194_v1 }
 0x208   :  { %v2217_v22 = vpop.f32.mrf.mxu2 }
 0x209   :  { %v4686_v22 = vld [vmem:[#allocation13 + $0x1d4] sm:$0xf0]  ;;  %2869 = vmatpush.bf16.msra.mxu2 %v4266_v43  ;;  %v4215_v43 = vld [vmem:[#allocation13 + $0x108] sm:$0xf0] }
 0x20a   :  { %v5060_v53 = vpop.f32.mrf.mxu1  ;;  %v4318_v25 = vor.u32 %v4686_v22, %v4317_v16 }
 0x20b   :  { %2858 = vmatpush.bf16.msra.mxu1 %v4186_v46  ;;  %v4239_v46 = vld [vmem:[#allocation13 + $0x138] sm:$0xf0] }
 0x20c   :  { %2831 = vmatpush.bf16.msrb.mxu3 %v4318_v25  ;;  %v4242_v20 = vor.u32 %v4665_v19, %v4239_v46  ;;  %v4677_v46 = vld [vmem:[#allocation13 + $0x194] sm:$0xf] }
 0x20d   :  { %2870 = vmatpush.bf16.msra.mxu2 %v4258_v59  ;;  %v4685_v59 = vld [vmem:[#allocation13 + $0x1d4] sm:$0xf] }
 0x20f   :  { %2859 = vmatpush.bf16.msra.mxu1 %v4178_v29 }
 0x210   :  { %2832 = vmatpush.bf16.msrb.mxu3 %v4310_v61 }
 0x211   :  { %v5067_v7 = vpop.f32.mrf.mxu2  ;;  %2871 = vmatpush.bf16.msra.mxu2 %v4250_v11 }
 0x212   :  { %v2308_v15 = vpop.f32.mrf.mxu1  ;;  %v2268_v36 = vadd.f32 %v5067_v7, %v2255_v34 }
 0x213   :  { %2860 = vmatpush.bf16.msra.mxu1 %v4170_v42  ;;  %v4682_v15 = vld [vmem:[#allocation13 + $0x1b4] sm:$0xf0] }
 0x214   :  { %v4302_v18 = vor.u32 %v4682_v15, %v4301_v14  ;;  %v4679_v15 = vld [vmem:[#allocation13 + $0x1a4] sm:$0xf] }
 0x215   :  { %2872 = vmatpush.bf16.msra.mxu2 %v4242_v20  ;;  %v4287_v20 = vld [vmem:[#allocation13 + $0x198] sm:$0xf0] }
 0x216   :  { %2833 = vmatpush.bf16.msrb.mxu3 %v4302_v18  ;;  %v4290_v21 = vor.u32 %v4677_v46, %v4287_v20 }
 0x217   :  { %2861 = vmatpush.bf16.msra.mxu1 %v4162_v55  ;;  %v4327_v55 = vld [vmem:[#allocation13 + $0x1e8] sm:$0xf0] }
 0x219   :  { %v5070_v33 = vpop.f32.mrf.mxu0  ;;  %v2269_v41 = vpop.f32.mrf.mxu2  ;;  %2873 = vmatpush.bf16.msra.mxu2 %v4234_v30 }
 0x21a   :  { %2834 = vmatpush.bf16.msrb.mxu3 %v4294_v28  ;;  %v4659_v41 = vld [vmem:[#allocation13 + $0x104] sm:$0xf]  ;;  %v2346_v28 = vadd.f32 %v5070_v33, %v1535_v27 }
 0x21b   :  { %2862 = vmatpush.bf16.msra.mxu1 %v4154_v5 }
 0x21d   :  { %2874 = vmatpush.bf16.msra.mxu2 %v4226_v57 }
 0x21e   :  { %2835 = vmatpush.bf16.msrb.mxu3 %v4286_v2 }
 0x21f   :  { %v2228_v47 = vpop.f32.mrf.mxu3 }
 0x220   :  { %v2229_v54 = vadd.f32 %v2228_v47, %v2216_v45  ;;  %v4335_v45 = vld [vmem:[#allocation13 + $0x1f8] sm:$0xf0]  ;;  %v4218_v47 = vor.u32 %v4659_v41, %v4215_v43 }
 0x221   :  { %v2347_v58 = vpop.f32.mrf.mxu0  ;;  %v5075_v26 = vpop.f32.mrf.mxu2  ;;  %v4338_v25 = vor.u32 %v4689_v44, %v4335_v45 }
 0x222   :  { %v2388_v51 = vmul.f32 0.01, %v2229_v54  ;;  %2836 = vmatpush.bf16.msrb.mxu3 %v4278_v9  ;;  %2875 = vmatpush.bf16.msra.mxu2 %v4218_v47  ;;  %v2294_v58 = vadd.f32 %v5056_v10, %v1534_v48 }
 0x224   :  { %v2392_v1 = vmax.f32 %v2229_v54, %v2388_v51  ;;  %v4687_v54 = vld [vmem:[#allocation13 + $0x1e4] sm:$0xf]  ;;  %v4319_v51 = vld [vmem:[#allocation13 + $0x1d8] sm:$0xf0]  ;;  %v2307_v37 = vadd.f32 %v5060_v53, %v2294_v58 }
 0x225   :  { %v4330_v56 = vor.u32 %v4687_v54, %v4327_v55  ;;  %v4322_v60 = vor.u32 %v4685_v59, %v4319_v51 }
 0x226   :  { %v2396_v13 = vpack.c.bf16 %v2392_v1, %v2392_v1  ;;  %2881 = vmatpush.bf16.msra.mxu3 %v4338_v25  ;;  %v2320_v61 = vadd.f32 %v5075_v26, %v2307_v37 }
 0x227   :  { %v2230_v17 = vpop.f32.mrf.mxu3 }
 0x228   :  { %2798 = vmatmul.bf16.vlgmr.msrb.gmra.mxu0 %v2396_v13  ;;  %v4295_v17 = vld [vmem:[#allocation13 + $0x1a8] sm:$0xf0] }
 0x229   :  { %v2321_v29 = vpop.f32.mrf.mxu2  ;;  %v4298_v19 = vor.u32 %v4679_v15, %v4295_v17 }
 0x22a   :  { %v5079_v8 = vpop.f32.mrf.mxu1  ;;  %2882 = vmatpush.bf16.msra.mxu3 %v4330_v56 }
 0x22b   :  { %v2359_v29 = vadd.f32 %v5079_v8, %v2346_v28 }
 0x22e   :  { %2883 = vmatpush.bf16.msra.mxu3 %v4322_v60 }
 0x22f   :  { %v2280_v38 = vpop.f32.mrf.mxu3 }
 0x230   :  { %v2281_v42 = vadd.f32 %v2280_v38, %v2268_v36 }
 0x232   :  { %v2389_v16 = vmul.f32 0.01, %v2281_v42  ;;  %v2360_v22 = vpop.f32.mrf.mxu1  ;;  %2884 = vmatpush.bf16.msra.mxu3 %v4314_v6 }
 0x234   :  { %v2393_v7 = vmax.f32 %v2281_v42, %v2389_v16  ;;  %v2464_v16 = vld [vmem:[%s5104_s8] sm:$0x3]  ;;  %s4922_s8 = smov [#allocation14]  }
 0x235   :  { %v2466_v22 = vperm.slane %v2464_v16, 0  ;;  %v2467_v9 = vperm.slane %v2464_v16, 1  ;;  %s2916_s23 = sshll.u32 %s4922_s8, 4  ;;  %s2917_s23 = int_to_ptr.vmem [resolvable:$true] %s2916_s23 }
 0x236   :  { %v2397_v49 = vpack.c.bf16 %v2393_v7, %v2393_v7 }
 0x237   :  { %v2282_v50 = vpop.f32.mrf.mxu3 }
 0x238   :  { %2811 = vmatmul.bf16.vlgmr.msrb.gmra.mxu1 %v2397_v49  ;;  %2850 = vmatmul.bf16.vlgmr.msra.gmra.mxu0 %v2396_v13  ;;  %v4303_v13 = vld [vmem:[#allocation13 + $0x1b8] sm:$0xf0] }
 0x239   :  { %v4306_v14 = vor.u32 %v4681_v12, %v4303_v13 }
 0x23b   :  { %2885 = vmatpush.bf16.msra.mxu3 %v4306_v14 }
 0x23f   :  { %v2332_v62 = vpop.f32.mrf.mxu3  ;;  %2886 = vmatpush.bf16.msra.mxu3 %v4298_v19 }
 0x240   :  { %v2333_v1 = vadd.f32 %v2332_v62, %v2320_v61 }
 0x241   :  { %v2371_v5 = vpop.f32.mrf.mxu2 }
 0x242   :  { %v2390_v11 = vmul.f32 0.01, %v2333_v1  ;;  %v2372_v30 = vadd.f32 %v2371_v5, %v2359_v29 }
 0x243   :  { %2887 = vmatpush.bf16.msra.mxu3 %v4290_v21 }
 0x244   :  { %v2394_v10 = vmax.f32 %v2333_v1, %v2390_v11 }
 0x246   :  { %v2398_v18 = vpack.c.bf16 %v2394_v10, %v2394_v10 }
 0x247   :  { %v2334_v53 = vpop.f32.mrf.mxu3  ;;  %2888 = vmatpush.bf16.msra.mxu3 %v4282_v4 }
 0x248   :  { %2824 = vmatmul.bf16.vlgmr.msrb.gmra.mxu2 %v2398_v18  ;;  %2863 = vmatmul.bf16.vlgmr.msra.gmra.mxu1 %v2397_v49 }
 0x249   :  { %v2373_v26 = vpop.f32.mrf.mxu2 }
 0x258   :  { %2876 = vmatmul.bf16.vlgmr.msra.gmra.mxu2 %v2398_v18 }
 0x25f   :  { %v2384_v31 = vpop.f32.mrf.mxu3 }
 0x260   :  { %v2385_v32 = vadd.f32 %v2384_v31, %v2372_v30 }
 0x262   :  { %v2391_v34 = vmul.f32 0.01, %v2385_v32 }
 0x264   :  { %v2395_v35 = vmax.f32 %v2385_v32, %v2391_v34 }
 0x266   :  { %v2399_v52 = vpack.c.bf16 %v2395_v35, %v2395_v35 }
 0x267   :  { %v2386_v36 = vpop.f32.mrf.mxu3 }
 0x268   :  { %2837 = vmatmul.bf16.vlgmr.msrb.gmra.mxu3 %v2399_v52 }
 0x278   :  { %2889 = vmatmul.bf16.vlgmr.msra.gmra.mxu3 %v2399_v52 }
 0x2a5   :  { %v2799_v2 = vpop.f32.mrf.mxu0 }
 0x2a6   :  { %v2800_v25 = vadd.f32 %v2799_v2, %v2466_v22 }
 0x2ad   :  { %v2801_v38 = vpop.f32.mrf.mxu0 }
 0x2b5   :  { %v2812_v57 = vpop.f32.mrf.mxu1  ;;  %v2851_v39 = vpop.f32.mrf.mxu0 }
 0x2b6   :  { %v2852_v7 = vadd.f32 %v2851_v39, %v2467_v9  ;;  %v2813_v48 = vadd.f32 %v2812_v57, %v2800_v25 }
 0x2bd   :  { %v2814_v3 = vpop.f32.mrf.mxu1  ;;  %v2853_v40 = vpop.f32.mrf.mxu0 }
 0x2c5   :  { %v2864_v41 = vpop.f32.mrf.mxu1 }
 0x2c6   :  { %v2865_v49 = vadd.f32 %v2864_v41, %v2852_v7 }
 0x2cb   :  { %v2825_v33 = vpop.f32.mrf.mxu2 }
 0x2cc   :  { %v2826_v50 = vadd.f32 %v2825_v33, %v2813_v48 }
 0x2cd   :  { %v2866_v42 = vpop.f32.mrf.mxu1 }
 0x2d3   :  { %v2827_v43 = vpop.f32.mrf.mxu2 }
 0x2db   :  { %v2877_v8 = vpop.f32.mrf.mxu2 }
 0x2dc   :  { %v2878_v54 = vadd.f32 %v2877_v8, %v2865_v49 }
 0x2e3   :  { %v2879_v44 = vpop.f32.mrf.mxu2 }
 0x2eb   :  { %v2838_v45 = vpop.f32.mrf.mxu3 }
 0x2ec   :  { %v2839_v56 = vadd.f32 %v2838_v45, %v2826_v50 }
 0x2f3   :  { %v2840_v47 = vpop.f32.mrf.mxu3 }
 0x2fb   :  { %v2890_v55 = vpop.f32.mrf.mxu3 }
 0x2fc   :  { %v2891_v58 = vadd.f32 %v2890_v55, %v2878_v54 }
 0x2fe   :  { %v2894_v59 = vmax.f32 %v2839_v56, %v2891_v58 }
 0x300   :  { %2895 = vmax.xlane.f32.xlu0 %v2894_v59 }
 0x303   :  { %v2892_v51 = vpop.f32.mrf.mxu3 }
 0x373   :  { %v2896_v37 = vpop.xlane.xlu0 %2895 }
 0x374   :  { %v2897_v60 = vsub.f32 %v2839_v56, %v2896_v37  ;;  %v2898_v61 = vsub.f32 %v2891_v58, %v2896_v37 }
 0x376   :  { %v2899_v62 = vmul.f32 1.442695, %v2897_v60  ;;  %v2901_v63 = vmul.f32 1.442695, %v2898_v61 }
 0x378   :  { %4703 = vpow2.f32 %v2899_v62 }
 0x379   :  { %4705 = vpow2.f32 %v2901_v63 }
 0x37e   :  { %v4704_v0 = vpop.eup %4703 }
 0x37f   :  { %v4706_v1 = vpop.eup %4705 }
 0x380   :  { %v2903_v5 = vadd.f32 %v4706_v1, %v4704_v0 }
 0x382   :  { %2904 = vadd.xlane.f32.xlu0 %v2903_v5 }
 0x3f5   :  { %v2905_v6 = vpop.xlane.xlu0 %2904 }
 0x3f6   :  { %4707 = vrcp.f32 %v2905_v6 }
 0x3fc   :  { %v4708_v11 = vpop.eup %4707 }
 0x3fd   :  { %v2907_v12 = vmul.f32 %v4708_v11, %v4704_v0  ;;  %v2908_v13 = vmul.f32 %v4708_v11, %v4706_v1 }
 0x3ff   :  { %2909 = vst [vmem:[#allocation14] sm:$0xff] %v2907_v12 }
 0x400   :  { %2910 = vst [vmem:[#allocation14 + $0x8] sm:$0xff] %v2908_v13 }
 0x401   :  { %2921 = dma.vmem_to_hbm [thread:$0]  %s2917_s23, 256, %s2919_s25, [#allocation4]  }
 0x402   :  { %4909 = dma.done.wait [#allocation4], 256  }
 0x403   :  { %4910 = vsyncadd [#allocation4], 4294967040 }
 0x404   :  { %2926 = vsyncpa [#allocation3], 1 }
 0x405   :  { %2927 = vsyncpa [#allocation6], 1 }
 0x406   :  { %2928 = vsyncpa [#allocation9], 1 }
 0x407   :  { %2929 = vsyncpa [#allocation12], 1 }
 0x408   :  { %2930 = vsyncpa [#allocation4], 1 }

</bundles_post_ra>
